<compile_context>
chip_gen: v5e
topology: v5e:2x2
jax: 0.10.0
libtpu: 0.0.40
codegen_flags: <defaults>
</compile_context>

<pallas_src>
import functools

import jax
import jax.numpy as jnp
from jax.experimental import pallas as pl
from jax.experimental.pallas import tpu as pltpu

NUM_HEADS = 4       # D = 3*w must be divisible by NUM_HEADS
LANE = 128          # lane width: padded model dim / padded ffn dim

PARAM_ORDER = (
    "wq", "bq", "wk", "bk", "wv", "bv", "wo", "bo",
    "ln1_g", "ln1_b",
    "w1", "b1", "w2", "b2",
    "ln2_g", "ln2_b",
)


# ----------------------------------------------------------------------------- kernel
def _transformer_kernel(
    x_ref,
    wq_ref, bq_ref, wk_ref, bk_ref, wv_ref, bv_ref, wo_ref, bo_ref,
    ln1_g_ref, ln1_b_ref,
    w1_ref, b1_ref, w2_ref, b2_ref,
    ln2_g_ref, ln2_b_ref,
    o_ref,
    *,
    bt, seq, dp, n_heads, dh_pad, d_valid, scale,
):
    # x block: (bt, seq, dp) f32; all padded lanes (>= d_valid, and the per-head
    # pad lanes of the padded weights) are zero by construction in the wrapper.
    x = x_ref[...].astype(jnp.float32).reshape(bt * seq, dp)

    lane = jax.lax.broadcasted_iota(jnp.int32, (1, dp), 1)
    valid_mask = (lane < d_valid).astype(jnp.float32)
    head_masks = [
        ((lane >= h * dh_pad) & (lane < (h + 1) * dh_pad)).astype(jnp.float32)
        for h in range(n_heads)
    ]

    def linear(v, w_ref, b_ref):
        # bf16 operands, f32 accumulation on the MXU; bias add in f32.
        return jnp.dot(v.astype(jnp.bfloat16), w_ref[...],
                       preferred_element_type=jnp.float32) + b_ref[...]

    def layernorm(v, g_ref, b_ref):
        # Statistics over the d_valid real lanes only (pad lanes of v are zero,
        # but (v - mu) is not, so mask explicitly).  gamma/beta pads are zero,
        # so padded output lanes stay exactly zero.
        mu = jnp.sum(v * valid_mask, axis=-1, keepdims=True) * (1.0 / d_valid)
        diff = (v - mu) * valid_mask
        var = jnp.sum(diff * diff, axis=-1, keepdims=True) * (1.0 / d_valid)
        inv = jax.lax.rsqrt(var + 1e-5)
        return diff * inv * g_ref[...] + b_ref[...]

    # ---- QKV projections over all bt*seq rows at once (fills the MXU M dim) ----
    q = linear(x, wq_ref, bq_ref)
    k = linear(x, wk_ref, bk_ref)
    v = linear(x, wv_ref, bv_ref)

    # ---- multi-head self attention, per batch row ----
    # Heads via full 128-lane matmuls + lane masks: scores_h = (Q*mask_h) @ K^T
    # (contraction over all 128 lanes equals the per-head contraction because the
    # masked lanes are zero), and head outputs are accumulated as (P @ V)*mask_h.
    # No sub-lane slices, no materialized transpose, no concatenate.
    def attend(qb, kb, vb):
        kb_bf = kb.astype(jnp.bfloat16)
        vb_bf = vb.astype(jnp.bfloat16)
        acc = jnp.zeros((seq, dp), jnp.float32)
        for hm in head_masks:
            qh = (qb * hm).astype(jnp.bfloat16)
            s = jax.lax.dot_general(
                qh, kb_bf, (((1,), (1,)), ((), ())),
                preferred_element_type=jnp.float32) * scale
            s = s - jnp.max(s, axis=-1, keepdims=True)
            p = jnp.exp(s)
            p = p * pl.reciprocal(jnp.sum(p, axis=-1, keepdims=True), approx=True)
            pv = jnp.dot(p.astype(jnp.bfloat16), vb_bf,
                         preferred_element_type=jnp.float32)
            acc = acc + pv * hm
        return acc

    rows = []
    for b in range(bt):  # static; row slices are sublane-aligned (seq % 8 == 0)
        sl = slice(b * seq, (b + 1) * seq)
        rows.append(attend(q[sl], k[sl], v[sl]))
    attn = rows[0] if bt == 1 else jnp.concatenate(rows, axis=0)

    attn = linear(attn, wo_ref, bo_ref)
    y = layernorm(x + attn, ln1_g_ref, ln1_b_ref)

    # ---- feed-forward ----
    hid = jnp.maximum(linear(y, w1_ref, b1_ref), 0.0)
    ff = linear(hid, w2_ref, b2_ref)
    z = layernorm(y + ff, ln2_g_ref, ln2_b_ref)

    o_ref[...] = z.reshape(bt, seq, dp).astype(o_ref.dtype)


# ----------------------------------------------------------------------------- padding helpers
def _pad_to(a, axis, new_size):
    pad = new_size - a.shape[axis]
    if pad == 0:
        return a
    cfg = [(0, 0)] * a.ndim
    cfg[axis] = (0, pad)
    return jnp.pad(a, cfg)


def _pad_heads(a, axis, n_heads, dh, dh_pad):
    # Scatter head h's dh features into lanes [h*dh_pad, h*dh_pad + dh) of the
    # padded head-space axis (so padded per-head blocks line up with lane masks).
    shape = list(a.shape)
    shape[axis:axis + 1] = [n_heads, dh]
    a = a.reshape(shape)
    cfg = [(0, 0)] * a.ndim
    cfg[axis + 1] = (0, dh_pad - dh)
    a = jnp.pad(a, cfg)
    shape2 = list(a.shape)
    shape2[axis:axis + 2] = [n_heads * dh_pad]
    return a.reshape(shape2)


def _prepare_inputs(xr, params, dp, fp, n_heads, dh, dh_pad):
    f32, bf16 = jnp.float32, jnp.bfloat16
    p = params
    xpad = _pad_to(xr.astype(f32), 2, dp)

    def qkv_w(w):   # rows: model dim end-padded; cols: head-layout padded
        return _pad_heads(_pad_to(w, 0, dp), 1, n_heads, dh, dh_pad).astype(bf16)

    def qkv_b(b):
        return _pad_heads(b, 1, n_heads, dh, dh_pad).astype(f32)

    padded = {
        "wq": qkv_w(p["wq"]), "bq": qkv_b(p["bq"]),
        "wk": qkv_w(p["wk"]), "bk": qkv_b(p["bk"]),
        "wv": qkv_w(p["wv"]), "bv": qkv_b(p["bv"]),
        # out-proj: rows live in head-space, cols in model space
        "wo": _pad_to(_pad_heads(p["wo"], 0, n_heads, dh, dh_pad), 1, dp).astype(bf16),
        "bo": _pad_to(p["bo"], 1, dp).astype(f32),
        "ln1_g": _pad_to(p["ln1_g"], 1, dp).astype(f32),
        "ln1_b": _pad_to(p["ln1_b"], 1, dp).astype(f32),
        "w1": _pad_to(_pad_to(p["w1"], 0, dp), 1, fp).astype(bf16),
        "b1": _pad_to(p["b1"], 1, fp).astype(f32),
        "w2": _pad_to(_pad_to(p["w2"], 0, fp), 1, dp).astype(bf16),
        "b2": _pad_to(p["b2"], 1, dp).astype(f32),
        "ln2_g": _pad_to(p["ln2_g"], 1, dp).astype(f32),
        "ln2_b": _pad_to(p["ln2_b"], 1, dp).astype(f32),
    }
    return xpad, [padded[name] for name in PARAM_ORDER]


def _pick_bt(batch):
    # Fold up to 8 batch rows per grid step (amortize ~0.35us/step and fill the
    # MXU M dim) while keeping >= 2 parallel grid points when possible so both
    # v7x TensorCores get work.
    best = 1
    for cand in range(1, min(batch, 8) + 1):
        if batch % cand == 0 and batch // cand >= 2:
            best = cand
    return best


# ----------------------------------------------------------------------------- pallas wrapper
def transformer_pallas(xr, params):
    """xr: (B, S, D) float32.  Runs the transformer encoder layer in Pallas."""
    B, S, D = xr.shape
    H = NUM_HEADS
    assert D % H == 0, "model dim must be divisible by NUM_HEADS"
    dh = D // H
    dp = LANE                      # lane-dense model dim
    dh_pad = dp // H
    assert D <= dp and dh <= dh_pad
    f = params["w1"].shape[1]
    fp = ((f + LANE - 1) // LANE) * LANE

    xpad, plist = _prepare_inputs(xr, params, dp, fp, H, dh, dh_pad)

    bt = _pick_bt(B)
    grid = (B // bt,)
    kernel = functools.partial(
        _transformer_kernel,
        bt=bt, seq=S, dp=dp, n_heads=H, dh_pad=dh_pad, d_valid=D,
        scale=1.0 / float(dh) ** 0.5,
    )

    in_specs = [pl.BlockSpec((bt, S, dp), lambda i: (i, 0, 0))] + [
        pl.BlockSpec(w.shape, lambda i: (0, 0)) for w in plist
    ]
    out = pl.pallas_call(
        kernel,
        out_shape=jax.ShapeDtypeStruct((B, S, dp), jnp.float32),
        grid_spec=pltpu.PrefetchScalarGridSpec(
            num_scalar_prefetch=0,
            grid=grid,
            in_specs=in_specs,
            out_specs=pl.BlockSpec((bt, S, dp), lambda i: (i, 0, 0)),
        ),
        compiler_params=pltpu.CompilerParams(dimension_semantics=("parallel",)),
    )(xpad, *plist)
    return out[:, :, :D]   # drop the zero pad lanes


# ----------------------------------------------------------------------------- params / forward
def init_params(key, d_model, d_ff):
    ks = jax.random.split(key, 8)
    sc_attn = 1.0 / jnp.sqrt(jnp.float32(d_model))
    sc_ff = 1.0 / jnp.sqrt(jnp.float32(d_ff))
    return {
        "wq": jax.random.normal(ks[0], (d_model, d_model), jnp.float32) * sc_attn,
        "bq": jnp.zeros((1, d_model), jnp.float32),
        "wk": jax.random.normal(ks[1], (d_model, d_model), jnp.float32) * sc_attn,
        "bk": jnp.zeros((1, d_model), jnp.float32),
        "wv": jax.random.normal(ks[2], (d_model, d_model), jnp.float32) * sc_attn,
        "bv": jnp.zeros((1, d_model), jnp.float32),
        "wo": jax.random.normal(ks[3], (d_model, d_model), jnp.float32) * sc_attn,
        "bo": jnp.zeros((1, d_model), jnp.float32),
        "ln1_g": jnp.ones((1, d_model), jnp.float32),
        "ln1_b": jnp.zeros((1, d_model), jnp.float32),
        "w1": jax.random.normal(ks[4], (d_model, d_ff), jnp.float32) * sc_attn,
        "b1": jnp.zeros((1, d_ff), jnp.float32),
        "w2": jax.random.normal(ks[5], (d_ff, d_model), jnp.float32) * sc_ff,
        "b2": jnp.zeros((1, d_model), jnp.float32),
        "ln2_g": jnp.ones((1, d_model), jnp.float32),
        "ln2_b": jnp.zeros((1, d_model), jnp.float32),
    }


@jax.jit
def ann_basic_forward(x, params):
    # x: (B, 5, h, 3, w)
    B, five, h, three, w = x.shape
    # Faithful reproduction of the PyTorch glue (fuses into one XLA copy under jit):
    #   permute(0,1,3,2,4); reshape (B, 5h, 3, w); view (B, 5h, 3w)
    xp = jnp.transpose(x, (0, 1, 3, 2, 4))
    xr = xp.reshape(B, five * h, three, w)
    xv = xr.reshape(B, five * h, three * w)
    return transformer_pallas(xv, params)


if __name__ == "__main__":
    B, h, w = 2, 8, 16          # -> seq S = 5*h = 40, model dim D = 3*w = 48
    d_model, d_ff = 3 * w, 64

    key = jax.random.PRNGKey(0)
    kx, kp = jax.random.split(key)
    x = jax.random.normal(kx, (B, 5, h, 3, w), jnp.float32)
    params = init_params(kp, d_model, d_ff)

    y = ann_basic_forward(x, params)
    jax.block_until_ready(y)
    assert y.shape == (B, 5 * h, 3 * w) and y.dtype == jnp.float32
    assert bool(jnp.isfinite(y).all())
    print("KERNEL_OK")
</pallas_src>

<mosaic_0001>
module attributes {stable_mosaic.version = 11 : i64} {
  func.func @_transformer_kernel(%arg0: i32, %arg1: memref<1x40x128xf32, #tpu.memory_space<vmem>>, %arg2: memref<128x128xbf16, #tpu.memory_space<vmem>>, %arg3: memref<1x128xf32, #tpu.memory_space<vmem>>, %arg4: memref<128x128xbf16, #tpu.memory_space<vmem>>, %arg5: memref<1x128xf32, #tpu.memory_space<vmem>>, %arg6: memref<128x128xbf16, #tpu.memory_space<vmem>>, %arg7: memref<1x128xf32, #tpu.memory_space<vmem>>, %arg8: memref<128x128xbf16, #tpu.memory_space<vmem>>, %arg9: memref<1x128xf32, #tpu.memory_space<vmem>>, %arg10: memref<1x128xf32, #tpu.memory_space<vmem>>, %arg11: memref<1x128xf32, #tpu.memory_space<vmem>>, %arg12: memref<128x128xbf16, #tpu.memory_space<vmem>>, %arg13: memref<1x128xf32, #tpu.memory_space<vmem>>, %arg14: memref<128x128xbf16, #tpu.memory_space<vmem>>, %arg15: memref<1x128xf32, #tpu.memory_space<vmem>>, %arg16: memref<1x128xf32, #tpu.memory_space<vmem>>, %arg17: memref<1x128xf32, #tpu.memory_space<vmem>>, %arg18: memref<1x40x128xf32, #tpu.memory_space<vmem>>) attributes {dimension_semantics = [#tpu.dimension_semantics<parallel>], iteration_bounds = array<i64: 2>, scalar_prefetch = 0 : i64, scratch_operands = 0 : i64, tpu.core_type = #tpu.core_type<tc>, window_params = [{transform_indices = @transform_0, window_bounds = array<i64: 1, 40, 128>}, {pipeline_mode = #tpu.pipeline_mode<synchronous>, transform_indices = @transform_1, window_bounds = array<i64: 128, 128>}, {pipeline_mode = #tpu.pipeline_mode<synchronous>, transform_indices = @transform_2, window_bounds = array<i64: 1, 128>}, {pipeline_mode = #tpu.pipeline_mode<synchronous>, transform_indices = @transform_3, window_bounds = array<i64: 128, 128>}, {pipeline_mode = #tpu.pipeline_mode<synchronous>, transform_indices = @transform_4, window_bounds = array<i64: 1, 128>}, {pipeline_mode = #tpu.pipeline_mode<synchronous>, transform_indices = @transform_5, window_bounds = array<i64: 128, 128>}, {pipeline_mode = #tpu.pipeline_mode<synchronous>, transform_indices = @transform_6, window_bounds = array<i64: 1, 128>}, {pipeline_mode = #tpu.pipeline_mode<synchronous>, transform_indices = @transform_7, window_bounds = array<i64: 128, 128>}, {pipeline_mode = #tpu.pipeline_mode<synchronous>, transform_indices = @transform_8, window_bounds = array<i64: 1, 128>}, {pipeline_mode = #tpu.pipeline_mode<synchronous>, transform_indices = @transform_9, window_bounds = array<i64: 1, 128>}, {pipeline_mode = #tpu.pipeline_mode<synchronous>, transform_indices = @transform_10, window_bounds = array<i64: 1, 128>}, {pipeline_mode = #tpu.pipeline_mode<synchronous>, transform_indices = @transform_11, window_bounds = array<i64: 128, 128>}, {pipeline_mode = #tpu.pipeline_mode<synchronous>, transform_indices = @transform_12, window_bounds = array<i64: 1, 128>}, {pipeline_mode = #tpu.pipeline_mode<synchronous>, transform_indices = @transform_13, window_bounds = array<i64: 128, 128>}, {pipeline_mode = #tpu.pipeline_mode<synchronous>, transform_indices = @transform_14, window_bounds = array<i64: 1, 128>}, {pipeline_mode = #tpu.pipeline_mode<synchronous>, transform_indices = @transform_15, window_bounds = array<i64: 1, 128>}, {pipeline_mode = #tpu.pipeline_mode<synchronous>, transform_indices = @transform_16, window_bounds = array<i64: 1, 128>}, {transform_indices = @transform_17, window_bounds = array<i64: 1, 40, 128>}]} {
    %c0 = arith.constant 0 : index
    %c0_0 = arith.constant 0 : index
    %c0_1 = arith.constant 0 : index
    %0 = vector.load %arg1[%c0, %c0_0, %c0_1] : memref<1x40x128xf32, #tpu.memory_space<vmem>>, vector<1x40x128xf32>
    %1 = vector.shape_cast %0 : vector<1x40x128xf32> to vector<40x128xf32>
    %2 = tpu.iota {dimensions = array<i32: 1>} : vector<1x128xi32>
    %c48_i32 = arith.constant 48 : i32
    %3 = vector.broadcast %c48_i32 : i32 to vector<1x128xi32>
    %4 = arith.cmpi slt, %2, %3 : vector<1x128xi32>
    %5 = arith.extui %4 : vector<1x128xi1> to vector<1x128xi32>
    %6 = arith.sitofp %5 : vector<1x128xi32> to vector<1x128xf32>
    %c0_i32 = arith.constant 0 : i32
    %7 = vector.broadcast %c0_i32 : i32 to vector<1x128xi32>
    %8 = arith.cmpi sge, %2, %7 : vector<1x128xi32>
    %c32_i32 = arith.constant 32 : i32
    %9 = vector.broadcast %c32_i32 : i32 to vector<1x128xi32>
    %10 = arith.cmpi slt, %2, %9 : vector<1x128xi32>
    %11 = arith.andi %8, %10 : vector<1x128xi1>
    %12 = arith.extui %11 : vector<1x128xi1> to vector<1x128xi32>
    %13 = arith.sitofp %12 : vector<1x128xi32> to vector<1x128xf32>
    %c32_i32_2 = arith.constant 32 : i32
    %14 = vector.broadcast %c32_i32_2 : i32 to vector<1x128xi32>
    %15 = arith.cmpi sge, %2, %14 : vector<1x128xi32>
    %c64_i32 = arith.constant 64 : i32
    %16 = vector.broadcast %c64_i32 : i32 to vector<1x128xi32>
    %17 = arith.cmpi slt, %2, %16 : vector<1x128xi32>
    %18 = arith.andi %15, %17 : vector<1x128xi1>
    %19 = arith.extui %18 : vector<1x128xi1> to vector<1x128xi32>
    %20 = arith.sitofp %19 : vector<1x128xi32> to vector<1x128xf32>
    %c64_i32_3 = arith.constant 64 : i32
    %21 = vector.broadcast %c64_i32_3 : i32 to vector<1x128xi32>
    %22 = arith.cmpi sge, %2, %21 : vector<1x128xi32>
    %c96_i32 = arith.constant 96 : i32
    %23 = vector.broadcast %c96_i32 : i32 to vector<1x128xi32>
    %24 = arith.cmpi slt, %2, %23 : vector<1x128xi32>
    %25 = arith.andi %22, %24 : vector<1x128xi1>
    %26 = arith.extui %25 : vector<1x128xi1> to vector<1x128xi32>
    %27 = arith.sitofp %26 : vector<1x128xi32> to vector<1x128xf32>
    %c96_i32_4 = arith.constant 96 : i32
    %28 = vector.broadcast %c96_i32_4 : i32 to vector<1x128xi32>
    %29 = arith.cmpi sge, %2, %28 : vector<1x128xi32>
    %c128_i32 = arith.constant 128 : i32
    %30 = vector.broadcast %c128_i32 : i32 to vector<1x128xi32>
    %31 = arith.cmpi slt, %2, %30 : vector<1x128xi32>
    %32 = arith.andi %29, %31 : vector<1x128xi1>
    %33 = arith.extui %32 : vector<1x128xi1> to vector<1x128xi32>
    %34 = arith.sitofp %33 : vector<1x128xi32> to vector<1x128xf32>
    %35 = arith.truncf %1 : vector<40x128xf32> to vector<40x128xbf16>
    %c0_5 = arith.constant 0 : index
    %c0_6 = arith.constant 0 : index
    %36 = vector.load %arg2[%c0_5, %c0_6] : memref<128x128xbf16, #tpu.memory_space<vmem>>, vector<128x128xbf16>
    %cst = arith.constant dense<0.000000e+00> : vector<40x128xf32>
    %37 = tpu.matmul %35, %36, %cst {dimension_numbers = #tpu.dot_dimension_numbers<[1], [0], [0], [1], [0, 0, 1, 1], [], []>} : vector<40x128xbf16>, vector<128x128xbf16>, vector<40x128xf32> -> vector<40x128xf32>
    %c0_7 = arith.constant 0 : index
    %c0_8 = arith.constant 0 : index
    %38 = vector.load %arg3[%c0_7, %c0_8] : memref<1x128xf32, #tpu.memory_space<vmem>>, vector<1x128xf32>
    %39 = vector.broadcast %38 : vector<1x128xf32> to vector<40x128xf32>
    %40 = arith.addf %37, %39 : vector<40x128xf32>
    %41 = arith.truncf %1 : vector<40x128xf32> to vector<40x128xbf16>
    %c0_9 = arith.constant 0 : index
    %c0_10 = arith.constant 0 : index
    %42 = vector.load %arg4[%c0_9, %c0_10] : memref<128x128xbf16, #tpu.memory_space<vmem>>, vector<128x128xbf16>
    %cst_11 = arith.constant dense<0.000000e+00> : vector<40x128xf32>
    %43 = tpu.matmul %41, %42, %cst_11 {dimension_numbers = #tpu.dot_dimension_numbers<[1], [0], [0], [1], [0, 0, 1, 1], [], []>} : vector<40x128xbf16>, vector<128x128xbf16>, vector<40x128xf32> -> vector<40x128xf32>
    %c0_12 = arith.constant 0 : index
    %c0_13 = arith.constant 0 : index
    %44 = vector.load %arg5[%c0_12, %c0_13] : memref<1x128xf32, #tpu.memory_space<vmem>>, vector<1x128xf32>
    %45 = vector.broadcast %44 : vector<1x128xf32> to vector<40x128xf32>
    %46 = arith.addf %43, %45 : vector<40x128xf32>
    %47 = arith.truncf %1 : vector<40x128xf32> to vector<40x128xbf16>
    %c0_14 = arith.constant 0 : index
    %c0_15 = arith.constant 0 : index
    %48 = vector.load %arg6[%c0_14, %c0_15] : memref<128x128xbf16, #tpu.memory_space<vmem>>, vector<128x128xbf16>
    %cst_16 = arith.constant dense<0.000000e+00> : vector<40x128xf32>
    %49 = tpu.matmul %47, %48, %cst_16 {dimension_numbers = #tpu.dot_dimension_numbers<[1], [0], [0], [1], [0, 0, 1, 1], [], []>} : vector<40x128xbf16>, vector<128x128xbf16>, vector<40x128xf32> -> vector<40x128xf32>
    %c0_17 = arith.constant 0 : index
    %c0_18 = arith.constant 0 : index
    %50 = vector.load %arg7[%c0_17, %c0_18] : memref<1x128xf32, #tpu.memory_space<vmem>>, vector<1x128xf32>
    %51 = vector.broadcast %50 : vector<1x128xf32> to vector<40x128xf32>
    %52 = arith.addf %49, %51 : vector<40x128xf32>
    %53 = arith.truncf %46 : vector<40x128xf32> to vector<40x128xbf16>
    %54 = arith.truncf %52 : vector<40x128xf32> to vector<40x128xbf16>
    %cst_19 = arith.constant 0.000000e+00 : f32
    %55 = vector.broadcast %cst_19 : f32 to vector<40x128xf32>
    %56 = vector.broadcast %13 : vector<1x128xf32> to vector<40x128xf32>
    %57 = arith.mulf %40, %56 : vector<40x128xf32>
    %58 = arith.truncf %57 : vector<40x128xf32> to vector<40x128xbf16>
    %cst_20 = arith.constant dense<0.000000e+00> : vector<40x40xf32>
    %59 = tpu.matmul %58, %53, %cst_20 {dimension_numbers = #tpu.dot_dimension_numbers<[1], [1], [0], [0], [0, 0, 1, 0], [], []>} : vector<40x128xbf16>, vector<40x128xbf16>, vector<40x40xf32> -> vector<40x40xf32>
    %cst_21 = arith.constant 0.288675129 : f32
    %60 = vector.broadcast %cst_21 : f32 to vector<40x40xf32>
    %61 = arith.mulf %59, %60 : vector<40x40xf32>
    %cst_22 = arith.constant dense<0xFF800000> : vector<40xf32>
    %62 = vector.multi_reduction <maximumf>, %61, %cst_22 [1] : vector<40x40xf32> to vector<40xf32>
    %63 = vector.shape_cast %62 : vector<40xf32> to vector<40x1xf32>
    %64 = vector.broadcast %63 : vector<40x1xf32> to vector<40x40xf32>
    %65 = arith.subf %61, %64 : vector<40x40xf32>
    %66 = math.exp %65 : vector<40x40xf32>
    %cst_23 = arith.constant dense<0.000000e+00> : vector<40xf32>
    %67 = vector.multi_reduction <add>, %66, %cst_23 [1] : vector<40x40xf32> to vector<40xf32>
    %68 = vector.shape_cast %67 : vector<40xf32> to vector<40x1xf32>
    %69 = tpu.reciprocal %68 {approx = true} : vector<40x1xf32> -> vector<40x1xf32>
    %70 = vector.broadcast %69 : vector<40x1xf32> to vector<40x40xf32>
    %71 = arith.mulf %66, %70 : vector<40x40xf32>
    %72 = arith.truncf %71 : vector<40x40xf32> to vector<40x40xbf16>
    %cst_24 = arith.constant dense<0.000000e+00> : vector<40x128xf32>
    %73 = tpu.matmul %72, %54, %cst_24 {dimension_numbers = #tpu.dot_dimension_numbers<[1], [0], [0], [1], [0, 0, 1, 1], [], []>} : vector<40x40xbf16>, vector<40x128xbf16>, vector<40x128xf32> -> vector<40x128xf32>
    %74 = vector.broadcast %13 : vector<1x128xf32> to vector<40x128xf32>
    %75 = arith.mulf %73, %74 : vector<40x128xf32>
    %76 = arith.addf %55, %75 : vector<40x128xf32>
    %77 = vector.broadcast %20 : vector<1x128xf32> to vector<40x128xf32>
    %78 = arith.mulf %40, %77 : vector<40x128xf32>
    %79 = arith.truncf %78 : vector<40x128xf32> to vector<40x128xbf16>
    %cst_25 = arith.constant dense<0.000000e+00> : vector<40x40xf32>
    %80 = tpu.matmul %79, %53, %cst_25 {dimension_numbers = #tpu.dot_dimension_numbers<[1], [1], [0], [0], [0, 0, 1, 0], [], []>} : vector<40x128xbf16>, vector<40x128xbf16>, vector<40x40xf32> -> vector<40x40xf32>
    %cst_26 = arith.constant 0.288675129 : f32
    %81 = vector.broadcast %cst_26 : f32 to vector<40x40xf32>
    %82 = arith.mulf %80, %81 : vector<40x40xf32>
    %cst_27 = arith.constant dense<0xFF800000> : vector<40xf32>
    %83 = vector.multi_reduction <maximumf>, %82, %cst_27 [1] : vector<40x40xf32> to vector<40xf32>
    %84 = vector.shape_cast %83 : vector<40xf32> to vector<40x1xf32>
    %85 = vector.broadcast %84 : vector<40x1xf32> to vector<40x40xf32>
    %86 = arith.subf %82, %85 : vector<40x40xf32>
    %87 = math.exp %86 : vector<40x40xf32>
    %cst_28 = arith.constant dense<0.000000e+00> : vector<40xf32>
    %88 = vector.multi_reduction <add>, %87, %cst_28 [1] : vector<40x40xf32> to vector<40xf32>
    %89 = vector.shape_cast %88 : vector<40xf32> to vector<40x1xf32>
    %90 = tpu.reciprocal %89 {approx = true} : vector<40x1xf32> -> vector<40x1xf32>
    %91 = vector.broadcast %90 : vector<40x1xf32> to vector<40x40xf32>
    %92 = arith.mulf %87, %91 : vector<40x40xf32>
    %93 = arith.truncf %92 : vector<40x40xf32> to vector<40x40xbf16>
    %cst_29 = arith.constant dense<0.000000e+00> : vector<40x128xf32>
    %94 = tpu.matmul %93, %54, %cst_29 {dimension_numbers = #tpu.dot_dimension_numbers<[1], [0], [0], [1], [0, 0, 1, 1], [], []>} : vector<40x40xbf16>, vector<40x128xbf16>, vector<40x128xf32> -> vector<40x128xf32>
    %95 = vector.broadcast %20 : vector<1x128xf32> to vector<40x128xf32>
    %96 = arith.mulf %94, %95 : vector<40x128xf32>
    %97 = arith.addf %76, %96 : vector<40x128xf32>
    %98 = vector.broadcast %27 : vector<1x128xf32> to vector<40x128xf32>
    %99 = arith.mulf %40, %98 : vector<40x128xf32>
    %100 = arith.truncf %99 : vector<40x128xf32> to vector<40x128xbf16>
    %cst_30 = arith.constant dense<0.000000e+00> : vector<40x40xf32>
    %101 = tpu.matmul %100, %53, %cst_30 {dimension_numbers = #tpu.dot_dimension_numbers<[1], [1], [0], [0], [0, 0, 1, 0], [], []>} : vector<40x128xbf16>, vector<40x128xbf16>, vector<40x40xf32> -> vector<40x40xf32>
    %cst_31 = arith.constant 0.288675129 : f32
    %102 = vector.broadcast %cst_31 : f32 to vector<40x40xf32>
    %103 = arith.mulf %101, %102 : vector<40x40xf32>
    %cst_32 = arith.constant dense<0xFF800000> : vector<40xf32>
    %104 = vector.multi_reduction <maximumf>, %103, %cst_32 [1] : vector<40x40xf32> to vector<40xf32>
    %105 = vector.shape_cast %104 : vector<40xf32> to vector<40x1xf32>
    %106 = vector.broadcast %105 : vector<40x1xf32> to vector<40x40xf32>
    %107 = arith.subf %103, %106 : vector<40x40xf32>
    %108 = math.exp %107 : vector<40x40xf32>
    %cst_33 = arith.constant dense<0.000000e+00> : vector<40xf32>
    %109 = vector.multi_reduction <add>, %108, %cst_33 [1] : vector<40x40xf32> to vector<40xf32>
    %110 = vector.shape_cast %109 : vector<40xf32> to vector<40x1xf32>
    %111 = tpu.reciprocal %110 {approx = true} : vector<40x1xf32> -> vector<40x1xf32>
    %112 = vector.broadcast %111 : vector<40x1xf32> to vector<40x40xf32>
    %113 = arith.mulf %108, %112 : vector<40x40xf32>
    %114 = arith.truncf %113 : vector<40x40xf32> to vector<40x40xbf16>
    %cst_34 = arith.constant dense<0.000000e+00> : vector<40x128xf32>
    %115 = tpu.matmul %114, %54, %cst_34 {dimension_numbers = #tpu.dot_dimension_numbers<[1], [0], [0], [1], [0, 0, 1, 1], [], []>} : vector<40x40xbf16>, vector<40x128xbf16>, vector<40x128xf32> -> vector<40x128xf32>
    %116 = vector.broadcast %27 : vector<1x128xf32> to vector<40x128xf32>
    %117 = arith.mulf %115, %116 : vector<40x128xf32>
    %118 = arith.addf %97, %117 : vector<40x128xf32>
    %119 = vector.broadcast %34 : vector<1x128xf32> to vector<40x128xf32>
    %120 = arith.mulf %40, %119 : vector<40x128xf32>
    %121 = arith.truncf %120 : vector<40x128xf32> to vector<40x128xbf16>
    %cst_35 = arith.constant dense<0.000000e+00> : vector<40x40xf32>
    %122 = tpu.matmul %121, %53, %cst_35 {dimension_numbers = #tpu.dot_dimension_numbers<[1], [1], [0], [0], [0, 0, 1, 0], [], []>} : vector<40x128xbf16>, vector<40x128xbf16>, vector<40x40xf32> -> vector<40x40xf32>
    %cst_36 = arith.constant 0.288675129 : f32
    %123 = vector.broadcast %cst_36 : f32 to vector<40x40xf32>
    %124 = arith.mulf %122, %123 : vector<40x40xf32>
    %cst_37 = arith.constant dense<0xFF800000> : vector<40xf32>
    %125 = vector.multi_reduction <maximumf>, %124, %cst_37 [1] : vector<40x40xf32> to vector<40xf32>
    %126 = vector.shape_cast %125 : vector<40xf32> to vector<40x1xf32>
    %127 = vector.broadcast %126 : vector<40x1xf32> to vector<40x40xf32>
    %128 = arith.subf %124, %127 : vector<40x40xf32>
    %129 = math.exp %128 : vector<40x40xf32>
    %cst_38 = arith.constant dense<0.000000e+00> : vector<40xf32>
    %130 = vector.multi_reduction <add>, %129, %cst_38 [1] : vector<40x40xf32> to vector<40xf32>
    %131 = vector.shape_cast %130 : vector<40xf32> to vector<40x1xf32>
    %132 = tpu.reciprocal %131 {approx = true} : vector<40x1xf32> -> vector<40x1xf32>
    %133 = vector.broadcast %132 : vector<40x1xf32> to vector<40x40xf32>
    %134 = arith.mulf %129, %133 : vector<40x40xf32>
    %135 = arith.truncf %134 : vector<40x40xf32> to vector<40x40xbf16>
    %cst_39 = arith.constant dense<0.000000e+00> : vector<40x128xf32>
    %136 = tpu.matmul %135, %54, %cst_39 {dimension_numbers = #tpu.dot_dimension_numbers<[1], [0], [0], [1], [0, 0, 1, 1], [], []>} : vector<40x40xbf16>, vector<40x128xbf16>, vector<40x128xf32> -> vector<40x128xf32>
    %137 = vector.broadcast %34 : vector<1x128xf32> to vector<40x128xf32>
    %138 = arith.mulf %136, %137 : vector<40x128xf32>
    %139 = arith.addf %118, %138 : vector<40x128xf32>
    %140 = arith.truncf %139 : vector<40x128xf32> to vector<40x128xbf16>
    %c0_40 = arith.constant 0 : index
    %c0_41 = arith.constant 0 : index
    %141 = vector.load %arg8[%c0_40, %c0_41] : memref<128x128xbf16, #tpu.memory_space<vmem>>, vector<128x128xbf16>
    %cst_42 = arith.constant dense<0.000000e+00> : vector<40x128xf32>
    %142 = tpu.matmul %140, %141, %cst_42 {dimension_numbers = #tpu.dot_dimension_numbers<[1], [0], [0], [1], [0, 0, 1, 1], [], []>} : vector<40x128xbf16>, vector<128x128xbf16>, vector<40x128xf32> -> vector<40x128xf32>
    %c0_43 = arith.constant 0 : index
    %c0_44 = arith.constant 0 : index
    %143 = vector.load %arg9[%c0_43, %c0_44] : memref<1x128xf32, #tpu.memory_space<vmem>>, vector<1x128xf32>
    %144 = vector.broadcast %143 : vector<1x128xf32> to vector<40x128xf32>
    %145 = arith.addf %142, %144 : vector<40x128xf32>
    %146 = arith.addf %1, %145 : vector<40x128xf32>
    %147 = vector.broadcast %6 : vector<1x128xf32> to vector<40x128xf32>
    %148 = arith.mulf %146, %147 : vector<40x128xf32>
    %cst_45 = arith.constant dense<0.000000e+00> : vector<40xf32>
    %149 = vector.multi_reduction <add>, %148, %cst_45 [1] : vector<40x128xf32> to vector<40xf32>
    %150 = vector.shape_cast %149 : vector<40xf32> to vector<40x1xf32>
    %cst_46 = arith.constant 0.020833334 : f32
    %151 = vector.broadcast %cst_46 : f32 to vector<40x1xf32>
    %152 = arith.mulf %150, %151 : vector<40x1xf32>
    %153 = vector.broadcast %152 : vector<40x1xf32> to vector<40x128xf32>
    %154 = arith.subf %146, %153 : vector<40x128xf32>
    %155 = vector.broadcast %6 : vector<1x128xf32> to vector<40x128xf32>
    %156 = arith.mulf %154, %155 : vector<40x128xf32>
    %157 = arith.mulf %156, %156 : vector<40x128xf32>
    %cst_47 = arith.constant dense<0.000000e+00> : vector<40xf32>
    %158 = vector.multi_reduction <add>, %157, %cst_47 [1] : vector<40x128xf32> to vector<40xf32>
    %159 = vector.shape_cast %158 : vector<40xf32> to vector<40x1xf32>
    %cst_48 = arith.constant 0.020833334 : f32
    %160 = vector.broadcast %cst_48 : f32 to vector<40x1xf32>
    %161 = arith.mulf %159, %160 : vector<40x1xf32>
    %cst_49 = arith.constant 9.99999974E-6 : f32
    %162 = vector.broadcast %cst_49 : f32 to vector<40x1xf32>
    %163 = arith.addf %161, %162 : vector<40x1xf32>
    %164 = math.rsqrt %163 : vector<40x1xf32>
    %165 = vector.broadcast %164 : vector<40x1xf32> to vector<40x128xf32>
    %166 = arith.mulf %156, %165 : vector<40x128xf32>
    %c0_50 = arith.constant 0 : index
    %c0_51 = arith.constant 0 : index
    %167 = vector.load %arg10[%c0_50, %c0_51] : memref<1x128xf32, #tpu.memory_space<vmem>>, vector<1x128xf32>
    %168 = vector.broadcast %167 : vector<1x128xf32> to vector<40x128xf32>
    %169 = arith.mulf %166, %168 : vector<40x128xf32>
    %c0_52 = arith.constant 0 : index
    %c0_53 = arith.constant 0 : index
    %170 = vector.load %arg11[%c0_52, %c0_53] : memref<1x128xf32, #tpu.memory_space<vmem>>, vector<1x128xf32>
    %171 = vector.broadcast %170 : vector<1x128xf32> to vector<40x128xf32>
    %172 = arith.addf %169, %171 : vector<40x128xf32>
    %173 = arith.truncf %172 : vector<40x128xf32> to vector<40x128xbf16>
    %c0_54 = arith.constant 0 : index
    %c0_55 = arith.constant 0 : index
    %174 = vector.load %arg12[%c0_54, %c0_55] : memref<128x128xbf16, #tpu.memory_space<vmem>>, vector<128x128xbf16>
    %cst_56 = arith.constant dense<0.000000e+00> : vector<40x128xf32>
    %175 = tpu.matmul %173, %174, %cst_56 {dimension_numbers = #tpu.dot_dimension_numbers<[1], [0], [0], [1], [0, 0, 1, 1], [], []>} : vector<40x128xbf16>, vector<128x128xbf16>, vector<40x128xf32> -> vector<40x128xf32>
    %c0_57 = arith.constant 0 : index
    %c0_58 = arith.constant 0 : index
    %176 = vector.load %arg13[%c0_57, %c0_58] : memref<1x128xf32, #tpu.memory_space<vmem>>, vector<1x128xf32>
    %177 = vector.broadcast %176 : vector<1x128xf32> to vector<40x128xf32>
    %178 = arith.addf %175, %177 : vector<40x128xf32>
    %cst_59 = arith.constant 0.000000e+00 : f32
    %179 = vector.broadcast %cst_59 : f32 to vector<40x128xf32>
    %180 = arith.maximumf %178, %179 : vector<40x128xf32>
    %181 = arith.truncf %180 : vector<40x128xf32> to vector<40x128xbf16>
    %c0_60 = arith.constant 0 : index
    %c0_61 = arith.constant 0 : index
    %182 = vector.load %arg14[%c0_60, %c0_61] : memref<128x128xbf16, #tpu.memory_space<vmem>>, vector<128x128xbf16>
    %cst_62 = arith.constant dense<0.000000e+00> : vector<40x128xf32>
    %183 = tpu.matmul %181, %182, %cst_62 {dimension_numbers = #tpu.dot_dimension_numbers<[1], [0], [0], [1], [0, 0, 1, 1], [], []>} : vector<40x128xbf16>, vector<128x128xbf16>, vector<40x128xf32> -> vector<40x128xf32>
    %c0_63 = arith.constant 0 : index
    %c0_64 = arith.constant 0 : index
    %184 = vector.load %arg15[%c0_63, %c0_64] : memref<1x128xf32, #tpu.memory_space<vmem>>, vector<1x128xf32>
    %185 = vector.broadcast %184 : vector<1x128xf32> to vector<40x128xf32>
    %186 = arith.addf %183, %185 : vector<40x128xf32>
    %187 = arith.addf %172, %186 : vector<40x128xf32>
    %188 = vector.broadcast %6 : vector<1x128xf32> to vector<40x128xf32>
    %189 = arith.mulf %187, %188 : vector<40x128xf32>
    %cst_65 = arith.constant dense<0.000000e+00> : vector<40xf32>
    %190 = vector.multi_reduction <add>, %189, %cst_65 [1] : vector<40x128xf32> to vector<40xf32>
    %191 = vector.shape_cast %190 : vector<40xf32> to vector<40x1xf32>
    %cst_66 = arith.constant 0.020833334 : f32
    %192 = vector.broadcast %cst_66 : f32 to vector<40x1xf32>
    %193 = arith.mulf %191, %192 : vector<40x1xf32>
    %194 = vector.broadcast %193 : vector<40x1xf32> to vector<40x128xf32>
    %195 = arith.subf %187, %194 : vector<40x128xf32>
    %196 = vector.broadcast %6 : vector<1x128xf32> to vector<40x128xf32>
    %197 = arith.mulf %195, %196 : vector<40x128xf32>
    %198 = arith.mulf %197, %197 : vector<40x128xf32>
    %cst_67 = arith.constant dense<0.000000e+00> : vector<40xf32>
    %199 = vector.multi_reduction <add>, %198, %cst_67 [1] : vector<40x128xf32> to vector<40xf32>
    %200 = vector.shape_cast %199 : vector<40xf32> to vector<40x1xf32>
    %cst_68 = arith.constant 0.020833334 : f32
    %201 = vector.broadcast %cst_68 : f32 to vector<40x1xf32>
    %202 = arith.mulf %200, %201 : vector<40x1xf32>
    %cst_69 = arith.constant 9.99999974E-6 : f32
    %203 = vector.broadcast %cst_69 : f32 to vector<40x1xf32>
    %204 = arith.addf %202, %203 : vector<40x1xf32>
    %205 = math.rsqrt %204 : vector<40x1xf32>
    %206 = vector.broadcast %205 : vector<40x1xf32> to vector<40x128xf32>
    %207 = arith.mulf %197, %206 : vector<40x128xf32>
    %c0_70 = arith.constant 0 : index
    %c0_71 = arith.constant 0 : index
    %208 = vector.load %arg16[%c0_70, %c0_71] : memref<1x128xf32, #tpu.memory_space<vmem>>, vector<1x128xf32>
    %209 = vector.broadcast %208 : vector<1x128xf32> to vector<40x128xf32>
    %210 = arith.mulf %207, %209 : vector<40x128xf32>
    %c0_72 = arith.constant 0 : index
    %c0_73 = arith.constant 0 : index
    %211 = vector.load %arg17[%c0_72, %c0_73] : memref<1x128xf32, #tpu.memory_space<vmem>>, vector<1x128xf32>
    %212 = vector.broadcast %211 : vector<1x128xf32> to vector<40x128xf32>
    %213 = arith.addf %210, %212 : vector<40x128xf32>
    %214 = vector.shape_cast %213 : vector<40x128xf32> to vector<1x40x128xf32>
    %c0_74 = arith.constant 0 : index
    %c0_75 = arith.constant 0 : index
    %c0_76 = arith.constant 0 : index
    %215 = vector.load %arg18[%c0_74, %c0_75, %c0_76] : memref<1x40x128xf32, #tpu.memory_space<vmem>>, vector<1x40x128xf32>
    tpu.vector_store %arg18[%c0_74, %c0_75, %c0_76], %214 {strides = array<i32>} : memref<1x40x128xf32, #tpu.memory_space<vmem>>, vector<1x40x128xf32>,
    return
  }
  func.func @transform_0(%arg0: i32) -> (i32, i32, i32) {
    %c0_i32 = arith.constant 0 : i32
    %c0_i32_0 = arith.constant 0 : i32
    %c0_i32_1 = arith.constant 0 : i32
    return %arg0, %c0_i32, %c0_i32_0 : i32, i32, i32
  }
  func.func @transform_1(%arg0: i32) -> (i32, i32) {
    %c0_i32 = arith.constant 0 : i32
    %c0_i32_0 = arith.constant 0 : i32
    %c0_i32_1 = arith.constant 0 : i32
    return %c0_i32, %c0_i32_0 : i32, i32
  }
  func.func @transform_2(%arg0: i32) -> (i32, i32) {
    %c0_i32 = arith.constant 0 : i32
    %c0_i32_0 = arith.constant 0 : i32
    %c0_i32_1 = arith.constant 0 : i32
    return %c0_i32, %c0_i32_0 : i32, i32
  }
  func.func @transform_3(%arg0: i32) -> (i32, i32) {
    %c0_i32 = arith.constant 0 : i32
    %c0_i32_0 = arith.constant 0 : i32
    %c0_i32_1 = arith.constant 0 : i32
    return %c0_i32, %c0_i32_0 : i32, i32
  }
  func.func @transform_4(%arg0: i32) -> (i32, i32) {
    %c0_i32 = arith.constant 0 : i32
    %c0_i32_0 = arith.constant 0 : i32
    %c0_i32_1 = arith.constant 0 : i32
    return %c0_i32, %c0_i32_0 : i32, i32
  }
  func.func @transform_5(%arg0: i32) -> (i32, i32) {
    %c0_i32 = arith.constant 0 : i32
    %c0_i32_0 = arith.constant 0 : i32
    %c0_i32_1 = arith.constant 0 : i32
    return %c0_i32, %c0_i32_0 : i32, i32
  }
  func.func @transform_6(%arg0: i32) -> (i32, i32) {
    %c0_i32 = arith.constant 0 : i32
    %c0_i32_0 = arith.constant 0 : i32
    %c0_i32_1 = arith.constant 0 : i32
    return %c0_i32, %c0_i32_0 : i32, i32
  }
  func.func @transform_7(%arg0: i32) -> (i32, i32) {
    %c0_i32 = arith.constant 0 : i32
    %c0_i32_0 = arith.constant 0 : i32
    %c0_i32_1 = arith.constant 0 : i32
    return %c0_i32, %c0_i32_0 : i32, i32
  }
  func.func @transform_8(%arg0: i32) -> (i32, i32) {
    %c0_i32 = arith.constant 0 : i32
    %c0_i32_0 = arith.constant 0 : i32
    %c0_i32_1 = arith.constant 0 : i32
    return %c0_i32, %c0_i32_0 : i32, i32
  }
  func.func @transform_9(%arg0: i32) -> (i32, i32) {
    %c0_i32 = arith.constant 0 : i32
    %c0_i32_0 = arith.constant 0 : i32
    %c0_i32_1 = arith.constant 0 : i32
    return %c0_i32, %c0_i32_0 : i32, i32
  }
  func.func @transform_10(%arg0: i32) -> (i32, i32) {
    %c0_i32 = arith.constant 0 : i32
    %c0_i32_0 = arith.constant 0 : i32
    %c0_i32_1 = arith.constant 0 : i32
    return %c0_i32, %c0_i32_0 : i32, i32
  }
  func.func @transform_11(%arg0: i32) -> (i32, i32) {
    %c0_i32 = arith.constant 0 : i32
    %c0_i32_0 = arith.constant 0 : i32
    %c0_i32_1 = arith.constant 0 : i32
    return %c0_i32, %c0_i32_0 : i32, i32
  }
  func.func @transform_12(%arg0: i32) -> (i32, i32) {
    %c0_i32 = arith.constant 0 : i32
    %c0_i32_0 = arith.constant 0 : i32
    %c0_i32_1 = arith.constant 0 : i32
    return %c0_i32, %c0_i32_0 : i32, i32
  }
  func.func @transform_13(%arg0: i32) -> (i32, i32) {
    %c0_i32 = arith.constant 0 : i32
    %c0_i32_0 = arith.constant 0 : i32
    %c0_i32_1 = arith.constant 0 : i32
    return %c0_i32, %c0_i32_0 : i32, i32
  }
  func.func @transform_14(%arg0: i32) -> (i32, i32) {
    %c0_i32 = arith.constant 0 : i32
    %c0_i32_0 = arith.constant 0 : i32
    %c0_i32_1 = arith.constant 0 : i32
    return %c0_i32, %c0_i32_0 : i32, i32
  }
  func.func @transform_15(%arg0: i32) -> (i32, i32) {
    %c0_i32 = arith.constant 0 : i32
    %c0_i32_0 = arith.constant 0 : i32
    %c0_i32_1 = arith.constant 0 : i32
    return %c0_i32, %c0_i32_0 : i32, i32
  }
  func.func @transform_16(%arg0: i32) -> (i32, i32) {
    %c0_i32 = arith.constant 0 : i32
    %c0_i32_0 = arith.constant 0 : i32
    %c0_i32_1 = arith.constant 0 : i32
    return %c0_i32, %c0_i32_0 : i32, i32
  }
  func.func @transform_17(%arg0: i32) -> (i32, i32, i32) {
    %c0_i32 = arith.constant 0 : i32
    %c0_i32_0 = arith.constant 0 : i32
    %c0_i32_1 = arith.constant 0 : i32
    return %arg0, %c0_i32, %c0_i32_0 : i32, i32, i32
  }
}

</mosaic_0001>

<bundles_post_ra>
// kernel: ann_basic_forward.1
= control target key start
LH: loop header
LB: loop body
LE: loop exit
PB: predicated region body
PF: predicated region fallthrough
CT: control target
= control target key end

     0   :  { %s3309_s0 = inlined_call_operand.vmem [shape: f32[2,40,128], index: 0, kind: input, shape index: {}]   ;;  %s3310_s1 = inlined_call_operand.vmem [shape: bf16[128,128], index: 1, kind: input, shape index: {}]   ;;  %s3311_s2 = inlined_call_operand.vmem [shape: f32[1,128], index: 2, kind: input, shape index: {}]   ;;  %s3312_s3 = inlined_call_operand.vmem [shape: bf16[128,128], index: 3, kind: input, shape index: {}]   ;;  %s3313_s4 = inlined_call_operand.vmem [shape: f32[1,128], index: 4, kind: input, shape index: {}]   ;;  %s3314_s5 = inlined_call_operand.vmem [shape: bf16[128,128], index: 5, kind: input, shape index: {}]   ;;  %s3315_s6 = inlined_call_operand.vmem [shape: f32[1,128], index: 6, kind: input, shape index: {}]   ;;  %s3316_s7 = inlined_call_operand.vmem [shape: bf16[128,128], index: 7, kind: input, shape index: {}]   ;;  %s3317_s8 = inlined_call_operand.vmem [shape: f32[1,128], index: 8, kind: input, shape index: {}]   ;;  %s3318_s9 = inlined_call_operand.vmem [shape: f32[1,128], index: 9, kind: input, shape index: {}]   ;;  %s3319_s10 = inlined_call_operand.vmem [shape: f32[1,128], index: 10, kind: input, shape index: {}]   ;;  %s3320_s11 = inlined_call_operand.vmem [shape: bf16[128,128], index: 11, kind: input, shape index: {}]   ;;  %s3321_s12 = inlined_call_operand.vmem [shape: f32[1,128], index: 12, kind: input, shape index: {}]   ;;  %s3322_s13 = inlined_call_operand.vmem [shape: bf16[128,128], index: 13, kind: input, shape index: {}]   ;;  %s3323_s14 = inlined_call_operand.vmem [shape: f32[1,128], index: 14, kind: input, shape index: {}]   ;;  %s3324_s15 = inlined_call_operand.vmem [shape: f32[1,128], index: 15, kind: input, shape index: {}]   ;;  %s3325_s16 = inlined_call_operand.vmem [shape: f32[1,128], index: 16, kind: input, shape index: {}]   ;;  %s3326_s17 = inlined_call_operand.hbm [shape: f32[2,40,128], index: 17, kind: output, shape index: {}]  }
   0x1   :  { %3336 = sst [smem:[#allocation12_spill]] %s3309_s0 }
   0x2   :  { %3337 = sst [smem:[#allocation13_spill]] %s3310_s1 }
   0x3   :  { %3338 = sst [smem:[#allocation14_spill]] %s3311_s2 }
   0x4   :  { %3339 = sst [smem:[#allocation15_spill]] %s3312_s3 }
   0x5   :  { %3340 = sst [smem:[#allocation16_spill]] %s3313_s4 }
   0x6   :  { %22 = vsyncpa [#allocation3], 0 }
   0x7   :  { %24 = vsyncpa [#allocation3 + $0x1], 0  ;;  %s2641_s24 = smov 0   ;;  %s2643_s25 = smov 0  }
   0x8   :  { %s2645_s26 = smov 0   ;;  %s2647_s27 = smov 0  }
   0x9 LB: > { %3341 = sst [smem:[#allocation5_spill]] %s2534_s24  ;;  %s2662_s28 = sadd.s32 4294967295, %s2546_s27   ;;  %s2546_s27 = sphi %s2647_s27, %s3359_s27   ;;  %s2542_s26 = sphi %s2645_s26, %s3361_s26   ;;  %s2538_s25 = sphi %s2643_s25, %s3363_s25   ;;  %s2534_s24 = sphi %s2641_s24, %s3362_s24  }
   0xa   : > { %3342 = sst [smem:[#allocation6_spill]] %s2542_s26  ;;  %s2045_s29 = sadd.s32 4294967294, %s2546_s27  }
   0xb   : > { %3343 = sst [smem:[#allocation7_spill]] %s2546_s27  ;;  %s2666_s0 = sadd.s32 1, %s2546_s27  }
   0xc   : > { %3344 = sst [smem:[#allocation8_spill]] %s2666_s0  ;;  %s399_s30 = sadd.s32 1, %s2542_s26 }
   0xd   : > { %s396_s18 = ssub.s32 %s2546_s27, %s2666_s0  ;;  %p409_p0 = scmp.ne.s32.totalorder %s2542_s26, %s2538_s25 }
   0xe   : > { %p397_p1 = scmp.eq.s32.totalorder %s396_s18, 0  ;;  %p410_p2 = scmp.eq.s32.totalorder %s2662_s28, 1 }
   0xf   : > { %p415_p3 = scmp.ne.s32.totalorder %s2538_s25, %s2534_s24  ;;  %p416_p4 = scmp.eq.s32.totalorder %s2045_s29, 1 }
  0x10   : > { %s2677_s19 = scalar_select %p397_p1, %s2542_s26, %s399_s30  }
  0x11   : > { %p2679_p5 = por %p410_p2, %p409_p0  ;;  %p2683_p6 = por %p416_p4, %p415_p3 }
  0x12   : > { %3345 = sst [smem:[#allocation9_spill]] %s2677_s19  ;;  %p2048_p7 = scmp.ge.s32.totalorder %s2546_s27, 1 }
  0x13   : > { %s3346_s1 = scalar_select %p2679_p5, 1, 0 }
  0x14   : > { %s3348_s20 = scalar_select %p2683_p6, 1, 0 }
  0x15   : > { %3347 = sst [smem:[#allocation10_spill]] %s3346_s1  ;;  %p490_p8 = scmp.lt.s32.totalorder %s2546_s27, 3 }
  0x16   : > { %3349 = sst [smem:[#allocation11_spill]] %s3348_s20 }
  0x17   : > { %p491_p9 = pnand %p2048_p7, %p490_p8 }
  0x18   : > { %s3350_s23 = sld [smem:[#allocation13_spill]] (!%p491_p9)  ;;  %p542_p10 = scmp.lt.s32.totalorder (!%p491_p9), %s2662_s28, 1 }
  0x19   : > { %494 = sbr.rel (%p491_p9) target bundleno = 2342 (0x926), region = 88  ;;  %s3351_s27 = sld [smem:[#allocation12_spill]] (!%p491_p9) }
  0x1a   : > { %s3352_s3 = sld [smem:[#allocation15_spill]] (!%p491_p9)  ;;  %s539_s20 = sand.u32 (!%p491_p9), 1, %s2538_s25  }
  0x1b   : > { %s3353_s4 = sld [smem:[#allocation16_spill]] (!%p491_p9)  ;;  %s2324_s22 = smul.u32 (!%p491_p9), 40, %s539_s20 }
  0x1c   : > { %s3354_s2 = sld [smem:[#allocation14_spill]] (!%p491_p9)  ;;  %s2326_s19 = smul.u32 (!%p491_p9), 40, %s2662_s28 }
  0x1d   : > { %s3256_s30 = scalar_lea.vmem (!%p491_p9), [#allocation2], %s2324_s22 }
  0x1e   : > { %v2269_v0 = vld [vmem:[%s3350_s23 + $0x38] sm:$0xff]  ;;  %v2268_v1 = vld [vmem:[%s3350_s23 + $0x30] sm:$0xff]  ;;  %v2267_v2 = vld [vmem:[%s3350_s23 + $0x28] sm:$0xff]  ;;  %s543_s26 = scalar_select %p542_p10, %s2662_s28, 1  ;;  %v553_v38 = vlaneseq  ;;  %v2548_v42 = vmov 0.0   ;;  %vm964_vm1 = vcmask 1043456  }
  0x1f   : > { %2310 = vmatpush.bf16.msra.mxu1 %v2269_v0  ;;  %649 = vmatpush.bf16.msra.mxu0 %v2269_v0  ;;  %v2285_v3 = vld [vmem:[%s3314_s5 + $0x38] sm:$0xff]  ;;  %v2266_v4 = vld [vmem:[%s3350_s23 + $0x20] sm:$0xff]  ;;  %v2284_v5 = vld [vmem:[%s3314_s5 + $0x30] sm:$0xff]  ;;  %vm896_vm10 = vcmask 326656   ;;  %s1980_s0 = sshll.u32 %s3256_s30, 4  ;;  %s1968_s28 = scalar_lea.sflag [#allocation3], %s539_s20  ;;  %s1981_s0 = int_to_ptr.vmem [resolvable:$true] %s1980_s0 }
  0x20   : > { %831 = vmatpush.bf16.msra.mxu2 %v2285_v3  ;;  %v2265_v6 = vld [vmem:[%s3350_s23 + $0x18] sm:$0xff]  ;;  %v2283_v7 = vld [vmem:[%s3314_s5 + $0x28] sm:$0xff]  ;;  %v2264_v8 = vld [vmem:[%s3350_s23 + $0x10] sm:$0xff]  ;;  %s2325_s29 = smul.u32 40, %s543_s26  ;;  %v2773_v39 = vand.u32 127, %v553_v38 }
  0x21   : > { %v2282_v9 = vld [vmem:[%s3314_s5 + $0x20] sm:$0xff]  ;;  %v2263_v10 = vld [vmem:[%s3350_s23 + $0x8] sm:$0xff]  ;;  %v2281_v11 = vld [vmem:[%s3314_s5 + $0x18] sm:$0xff] }
  0x22   : > { %s2727_s1 = scalar_lea.vmem %s3351_s27, %s2325_s29  ;;  %v2262_v12 = vld [vmem:[%s3350_s23] sm:$0xff]  ;;  %v2277_v14 = vld [vmem:[%s3352_s3 + $0x38] sm:$0xff]  ;;  %v2280_v15 = vld [vmem:[%s3314_s5 + $0x10] sm:$0xff]  ;;  %vm555_vm0 = vcmp.lt.s32.totalorder %v2773_v39, 48  ;;  %vm559_vm2 = vcmp.lt.s32.totalorder %v2773_v39, 32  ;;  %vm563_vm3 = vcmp.ge.s32.totalorder %v2773_v39, 32  ;;  %s1979_s29 = scalar_lea.hbm %s3326_s17, %s2326_s19 }
  0x23   : > { %2311 = vmatpush.bf16.msra.mxu1 %v2268_v1  ;;  %650 = vmatpush.bf16.msra.mxu0 %v2268_v1  ;;  %v552_v13 = vld [vmem:[%s2727_s1 + $0x20] sm:$0xff]  ;;  %v549_v18 = vld [vmem:[%s2727_s1 + $0x8] sm:$0xff]  ;;  %v2276_v20 = vld [vmem:[%s3352_s3 + $0x30] sm:$0xff]  ;;  %v2777_v43 = vsel %vm555_vm0, 1.0, %v2548_v42  ;;  %vm564_vm4 = vcmp.lt.s32.totalorder %v2773_v39, 64  ;;  %vm568_vm6 = vcmp.ge.s32.totalorder %v2773_v39, 64 }
  0x24   : > { %832 = vmatpush.bf16.msra.mxu2 %v2284_v5  ;;  %v580_v16 = vpack.c.bf16 %v552_v13, %v552_v13  ;;  %v548_v17 = vld [vmem:[%s2727_s1] sm:$0xff]  ;;  %v2279_v19 = vld [vmem:[%s3314_s5 + $0x8] sm:$0xff]  ;;  %v2273_v25 = vld [vmem:[%s3352_s3 + $0x18] sm:$0xff]  ;;  %vm569_vm7 = vcmp.lt.s32.totalorder %v2773_v39, 96  ;;  %vm573_vm9 = vcmp.ge.s32.totalorder %v2773_v39, 96  ;;  %s1982_s21 = sshll.u32 %s1979_s29, 4  ;;  %s1983_s21 = int_to_ptr.hbm [resolvable:$true] %s1982_s21 }
  0x25   : > { %v578_v21 = vpack.c.bf16 %v549_v18, %v548_v17  ;;  %v2278_v22 = vld [vmem:[%s3314_s5] sm:$0xff]  ;;  %v2275_v23 = vld [vmem:[%s3352_s3 + $0x28] sm:$0xff]  ;;  %v550_v26 = vld [vmem:[%s2727_s1 + $0x10] sm:$0xff]  ;;  %s2498_s22 = sshra.s32 %s1983_s21, 4  ;;  %s2499_s22 = int_to_ptr.hbm [resolvable:$true] %s2498_s22 }
  0x26   : > { %v2274_v24 = vld [vmem:[%s3352_s3 + $0x20] sm:$0xff]  ;;  %v551_v27 = vld [vmem:[%s2727_s1 + $0x18] sm:$0xff]  ;;  %v2272_v28 = vld [vmem:[%s3352_s3 + $0x10] sm:$0xff]  ;;  %s2500_s24 = scalar_lea.hbm %s2499_s22, 40  ;;  %p2505_p0 = scmp.lt.s32.totalorder %s2499_s22, %s3326_s17 }
  0x27   : > { %2312 = vmatpush.bf16.msra.mxu1 %v2267_v2  ;;  %651 = vmatpush.bf16.msra.mxu0 %v2267_v2  ;;  %v579_v29 = vpack.c.bf16 %v551_v27, %v550_v26  ;;  %v2271_v30 = vld [vmem:[%s3352_s3 + $0x8] sm:$0xff]  ;;  %v2270_v31 = vld [vmem:[%s3352_s3] sm:$0xff]  ;;  %vm565_vm5 = vmand %vm563_vm3, %vm564_vm4  ;;  %p2501_p11 = scmp.ne.s32.totalorder %s2499_s22, %s2500_s24 }
  0x28   : > { %833 = vmatpush.bf16.msra.mxu2 %v2283_v7  ;;  %v2371_v44 = vld [vmem:[%s3315_s6] ss:$0 sm:$0xff]  ;;  %vm570_vm8 = vmand %vm568_vm6, %vm569_vm7 }
  0x29   : > { %v2370_v58 = vld [vmem:[%s3353_s4] ss:$0 sm:$0xff]  ;;  %p2502_p12 = pnand %p2501_p11, %p2679_p5 }
  0x2b   : > { %2313 = vmatpush.bf16.msra.mxu1 %v2266_v4  ;;  %652 = vmatpush.bf16.msra.mxu0 %v2266_v4  ;;  %v2369_v4 = vld [vmem:[%s3354_s2] ss:$0 sm:$0xff]  ;;  %p2503_p13 = pneg %p2502_p12 }
  0x2c   : > { %834 = vmatpush.bf16.msra.mxu2 %v2282_v9 }
  0x2f   : > { %2314 = vmatpush.bf16.msra.mxu1 %v2265_v6  ;;  %653 = vmatpush.bf16.msra.mxu0 %v2265_v6 }
  0x30   : > { %835 = vmatpush.bf16.msra.mxu2 %v2281_v11  ;;  %v2806_v11 = vsel %vm559_vm2, 1.0, %v2548_v42 }
  0x33   : > { %2315 = vmatpush.bf16.msra.mxu1 %v2264_v8  ;;  %654 = vmatpush.bf16.msra.mxu0 %v2264_v8 }
  0x34   : > { %836 = vmatpush.bf16.msra.mxu2 %v2280_v15 }
  0x37   : > { %2316 = vmatpush.bf16.msra.mxu1 %v2263_v10  ;;  %655 = vmatpush.bf16.msra.mxu0 %v2263_v10 }
  0x38   : > { %837 = vmatpush.bf16.msra.mxu2 %v2279_v19 }
  0x3b   : > { %2317 = vmatpush.bf16.msra.mxu1 %v2262_v12  ;;  %656 = vmatpush.bf16.msra.mxu0 %v2262_v12 }
  0x3c   : > { %838 = vmatpush.bf16.msra.mxu2 %v2278_v22 }
  0x3e   : > { %667 = vmatmul.bf16.vlgmr.msra.gmra.mxu1 %v580_v16  ;;  %657 = vmatmul.bf16.vlgmr.msra.gmra.mxu0 %v578_v21 }
  0x3f   : > { %740 = vmatpush.bf16.msrb.mxu1 %v2277_v14  ;;  %839 = vmatmul.bf16.vlgmr.msra.gmra.mxu2 %v578_v21 }
  0x43   : > { %741 = vmatpush.bf16.msrb.mxu1 %v2276_v20 }
  0x47   : > { %742 = vmatpush.bf16.msrb.mxu1 %v2275_v23 }
  0x4b   : > { %743 = vmatpush.bf16.msrb.mxu1 %v2274_v24 }
  0x4e   : > { %662 = vmatmul.bf16.gmra.mxu0 %v579_v29 }
  0x4f   : > { %744 = vmatpush.bf16.msrb.mxu1 %v2273_v25  ;;  %844 = vmatmul.bf16.gmra.mxu2 %v579_v29 }
  0x53   : > { %745 = vmatpush.bf16.msrb.mxu1 %v2272_v28 }
  0x57   : > { %746 = vmatpush.bf16.msrb.mxu1 %v2271_v30 }
  0x5b   : > { %747 = vmatpush.bf16.msrb.mxu1 %v2270_v31  ;;  %v2828_v31 = vsel %vm570_vm8, 1.0, %v2548_v42 }
  0x5e   : > { %748 = vmatmul.bf16.vlgmr.msrb.gmra.mxu1 %v578_v21 }
  0x5f   : > { %849 = vmatmul.bf16.gmra.mxu2 %v580_v16 }
  0x6e   : > { %753 = vmatmul.bf16.gmra.mxu1 %v579_v29 }
  0x7e   : > { %758 = vmatmul.bf16.gmra.mxu1 %v580_v16  ;;  %v2814_v16 = vsel %vm565_vm5, 1.0, %v2548_v42 }
  0xbb   : > { %v668_v32 = vpop.f32.mrf.mxu1  ;;  %v658_v61 = vpop.f32.mrf.mxu0 }
  0xbc   : > { %v2803_v7 = vadd.f32 %v2369_v4, %v668_v32  ;;  %v659_v8 = vadd.f32 %v2369_v4, %v658_v61  ;;  %v2831_v32 = vsel %vm573_vm9, 1.0, %v2548_v42 }
  0xbe   : > { %v860_v13 = vmul.f32 %v2806_v11, %v659_v8  ;;  %v864_v15 = vmul.f32 %v2806_v11, %v2803_v7  ;;  %v1001_v17 = vmul.f32 %v2814_v16, %v659_v8 }
  0xc0   : > { %v867_v20 = vpack.c.bf16 %v864_v15, %v864_v15 }
  0xc2   : > { %v840_v34 = vpop.f32.mrf.mxu2 }
  0xc3   : > { %v670_v33 = vpop.f32.mrf.mxu1  ;;  %v841_v52 = vadd.f32 %v2371_v44, %v840_v34  ;;  %v660_v3 = vpop.f32.mrf.mxu0 }
  0xc4   : > { %v661_v9 = vadd.f32 %v2369_v4, %v660_v3  ;;  %v1137_v33 = vmul.f32 %v2828_v31, %v659_v8 }
  0xc6   : > { %v861_v14 = vmul.f32 %v2806_v11, %v661_v9  ;;  %v1002_v18 = vmul.f32 %v2814_v16, %v661_v9  ;;  %v1138_v34 = vmul.f32 %v2828_v31, %v661_v9 }
  0xc8   : > { %v865_v19 = vpack.c.bf16 %v861_v14, %v860_v13  ;;  %v1006_v21 = vpack.c.bf16 %v1002_v18, %v1001_v17 }
  0xca   : > { %v842_v35 = vpop.f32.mrf.mxu2 }
  0xcb   : > { %v843_v54 = vadd.f32 %v2371_v44, %v842_v35  ;;  %v663_v12 = vpop.f32.mrf.mxu0  ;;  %v1273_v35 = vmul.f32 %v2831_v32, %v659_v8 }
  0xcc   : > { %v664_v23 = vadd.f32 %v2369_v4, %v663_v12 }
  0xcd   : > { %v2788_v57 = vpack.c.bf16 %v843_v54, %v841_v52 }
  0xce   : > { %v862_v25 = vmul.f32 %v2806_v11, %v664_v23  ;;  %v1003_v27 = vmul.f32 %v2814_v16, %v664_v23  ;;  %v1139_v39 = vmul.f32 %v2828_v31, %v664_v23 }
  0xd2   : > { %v845_v37 = vpop.f32.mrf.mxu2 }
  0xd3   : > { %v846_v49 = vadd.f32 %v2371_v44, %v845_v37  ;;  %v665_v22 = vpop.f32.mrf.mxu0  ;;  %v1142_v37 = vpack.c.bf16 %v1138_v34, %v1137_v33 }
  0xd4   : > { %v666_v24 = vadd.f32 %v2369_v4, %v665_v22 }
  0xd6   : > { %v863_v26 = vmul.f32 %v2806_v11, %v666_v24  ;;  %v1004_v28 = vmul.f32 %v2814_v16, %v666_v24  ;;  %v1276_v42 = vmul.f32 %v2831_v32, %v666_v24 }
  0xd8   : > { %v866_v29 = vpack.c.bf16 %v863_v26, %v862_v25  ;;  %v1007_v30 = vpack.c.bf16 %v1004_v28, %v1003_v27 }
  0xda   : > { %v847_v41 = vpop.f32.mrf.mxu2 }
  0xdb   : > { %v749_v36 = vpop.f32.mrf.mxu1  ;;  %v848_v50 = vadd.f32 %v2371_v44, %v847_v41  ;;  %v1275_v41 = vmul.f32 %v2831_v32, %v664_v23 }
  0xdc   : > { %v750_v6 = vadd.f32 %v2370_v58, %v749_v36  ;;  %v1274_v36 = vmul.f32 %v2831_v32, %v661_v9 }
  0xdd   : > { %v2785_v55 = vpack.c.bf16 %v848_v50, %v846_v49 }
  0xde   : > { %v1278_v38 = vpack.c.bf16 %v1274_v36, %v1273_v35 }
  0xe2   : > { %v850_v46 = vpop.f32.mrf.mxu2 }
  0xe3   : > { %v751_v40 = vpop.f32.mrf.mxu1  ;;  %v851_v47 = vadd.f32 %v2371_v44, %v850_v46  ;;  %v1141_v46 = vmul.f32 %v2828_v31, %v2803_v7 }
  0xe4   : > { %v752_v5 = vadd.f32 %v2370_v58, %v751_v40  ;;  %v1140_v40 = vmul.f32 %v2828_v31, %v666_v24 }
  0xe5   : > { %v859_v48 = vpack.c.bf16 %v851_v47, %v851_v47  ;;  %v1277_v47 = vmul.f32 %v2831_v32, %v2803_v7 }
  0xe6   : > { %v854_v10 = vpack.c.bf16 %v752_v5, %v750_v6  ;;  %v1143_v44 = vpack.c.bf16 %v1140_v40, %v1139_v39 }
  0xe7   : > { %v2782_v51 = vsel %vm964_vm1, %v859_v48, 0  ;;  %v1144_v48 = vpack.c.bf16 %v1141_v46, %v1141_v46  ;;  %v1280_v49 = vpack.c.bf16 %v1277_v47, %v1277_v47 }
  0xe8   : > { %1109 = vmatpush.bf16.msra.mxu1 %v2782_v51 }
  0xea   : > { %v852_v56 = vpop.f32.mrf.mxu2 }
  0xeb   : > { %v754_v45 = vpop.f32.mrf.mxu1 }
  0xec   : > { %1110 = vmatpush.bf16.msra.mxu1 %v2785_v55  ;;  %v755_v1 = vadd.f32 %v2370_v58, %v754_v45  ;;  %v1279_v45 = vpack.c.bf16 %v1276_v42, %v1275_v41 }
  0xf0   : > { %1111 = vmatpush.bf16.msra.mxu1 %v2788_v57 }
  0xf3   : > { %v756_v53 = vpop.f32.mrf.mxu1 }
  0xf4   : > { %1381 = vmatpush.bf16.msrb.mxu1 %v2782_v51  ;;  %v757_v63 = vadd.f32 %v2370_v58, %v756_v53 }
  0xf6   : > { %v855_v2 = vpack.c.bf16 %v757_v63, %v755_v1 }
  0xf8   : > { %1382 = vmatpush.bf16.msrb.mxu1 %v2785_v55 }
  0xfb   : > { %v759_v59 = vpop.f32.mrf.mxu1 }
  0xfc   : > { %v760_v60 = vadd.f32 %v2370_v58, %v759_v59  ;;  %1383 = vmatpush.bf16.msrb.mxu1 %v2788_v57 }
  0xfe   : > { %v856_v62 = vpack.c.bf16 %v760_v60, %v760_v60 }
 0x100   : > { %873 = vmatpush.bf16.xpose.msrb.mxu2 %v856_v62  ;;  %2318 = vmatpush.bf16.xpose.msra.mxu3 %v856_v62 }
 0x101   : > { %1014 = vmatpush.bf16.xpose.msrb.mxu0 %v856_v62 }
 0x103   : > { %v761_v0 = vpop.f32.mrf.mxu1 }
 0x108   : > { %874 = vmatpush.bf16.xpose.msrb.mxu2 %v855_v2  ;;  %2319 = vmatpush.bf16.xpose.msra.mxu3 %v855_v2 }
 0x109   : > { %1015 = vmatpush.bf16.xpose.msrb.mxu0 %v855_v2 }
 0x110   : > { %875 = vmatpush.bf16.xpose.msrb.mxu2 %v854_v10  ;;  %2320 = vmatpush.bf16.xpose.msra.mxu3 %v854_v10 }
 0x111   : > { %1016 = vmatpush.bf16.xpose.msrb.mxu0 %v854_v10 }
 0x117   : > { %876 = vmatmul.bf16.vlgmr.msrb.gmra.mxu2 %v865_v19  ;;  %886 = vmatmul.bf16.vlgmr.msra.gmra.mxu3 %v867_v20 }
 0x118   : > { %973 = vmatpush.bf16.msrb.mxu3 %v2782_v51  ;;  %1150 = vmatpush.bf16.xpose.msra.mxu2 %v856_v62 }
 0x119   : > { %1286 = vmatpush.bf16.xpose.msra.mxu0 %v856_v62 }
 0x11a   : > { %1017 = vmatmul.bf16.vlgmr.msrb.gmra.mxu0 %v1006_v21 }
 0x11c   : > { %974 = vmatpush.bf16.msrb.mxu3 %v2785_v55 }
 0x120   : > { %975 = vmatpush.bf16.msrb.mxu3 %v2788_v57  ;;  %1151 = vmatpush.bf16.xpose.msra.mxu2 %v855_v2 }
 0x121   : > { %1287 = vmatpush.bf16.xpose.msra.mxu0 %v855_v2 }
 0x124   : > { %2321 = vmatpush.bf16.xpose.msra.mxu3 %v856_v62 }
 0x127   : > { %881 = vmatmul.bf16.gmra.mxu2 %v866_v29 }
 0x128   : > { %1152 = vmatpush.bf16.xpose.msra.mxu2 %v854_v10 }
 0x129   : > { %1288 = vmatpush.bf16.xpose.msra.mxu0 %v854_v10 }
 0x12a   : > { %1022 = vmatmul.bf16.gmra.mxu0 %v1007_v30 }
 0x12c   : > { %2322 = vmatpush.bf16.xpose.msra.mxu3 %v855_v2 }
 0x134   : > { %2323 = vmatpush.bf16.xpose.msra.mxu3 %v854_v10 }
 0x137   : > { %1153 = vmatmul.bf16.vlgmr.msra.gmra.mxu2 %v1142_v37 }
 0x13a   : > { %1289 = vmatmul.bf16.vlgmr.msra.gmra.mxu0 %v1278_v38 }
 0x147   : > { %1158 = vmatmul.bf16.gmra.mxu2 %v1143_v44 }
 0x14a   : > { %1294 = vmatmul.bf16.gmra.mxu0 %v1279_v45 }
 0x157   : > { %1163 = vmatmul.bf16.gmra.mxu2 %v1144_v48 }
 0x15a   : > { %1299 = vmatmul.bf16.gmra.mxu0 %v1280_v49 }
 0x197   : > { %v2845_v50 = vpop.f32.mrf.mxu0 }
 0x19a   : > { %v877_v52 = vpop.f32.mrf.mxu2  ;;  %v887_v53 = vpop.f32.mrf.mxu3 }
 0x19b   : > { %v891_v54 = vmul.f32 0.28867513, %v877_v52  ;;  %v895_v56 = vmul.f32 0.28867513, %v887_v53  ;;  %v1032_v52 = vmul.f32 0.28867513, %v2845_v50 }
 0x19d   : > { %v909_v59 = vsel %vm896_vm10, %v895_v56, -inf  ;;  %v897_v60 = vsel %vm896_vm10, %v891_v54, -inf }
 0x19e   : > { %910 = vmax.xlane.f32.xlu2 %v909_v59  ;;  %898 = vmax.xlane.f32.xlu0 %v897_v60  ;;  %v1037_v59 = vsel %vm896_vm10, %v1032_v52, -inf }
 0x19f   : > { %v2847_v58 = vpop.f32.mrf.mxu0 }
 0x1a2   : > { %v879_v61 = vpop.f32.mrf.mxu2  ;;  %v889_v62 = vpop.f32.mrf.mxu3 }
 0x1a3   : > { %v892_v63 = vmul.f32 0.28867513, %v879_v61 }
 0x1a5   : > { %v900_v1 = vsel %vm896_vm10, %v892_v63, -inf }
 0x1a6   : > { %901 = vmax.xlane.f32.xlu0 %v900_v1 }
 0x1a7   : > { %v1023_v0 = vpop.f32.mrf.mxu0 }
 0x1a8   : > { %v2874_v53 = vmul.f32 0.28867513, %v1023_v0 }
 0x1aa   : > { %v882_v2 = vpop.f32.mrf.mxu2 }
 0x1ab   : > { %v893_v3 = vmul.f32 0.28867513, %v882_v2 }
 0x1ad   : > { %v903_v5 = vsel %vm896_vm10, %v893_v3, -inf }
 0x1ae   : > { %904 = vmax.xlane.f32.xlu1 %v903_v5 }
 0x1af   : > { %v1025_v4 = vpop.f32.mrf.mxu0 }
 0x1b0   : > { %v2880_v61 = vmul.f32 0.28867513, %v1025_v4 }
 0x1b2   : > { %v884_v6 = vpop.f32.mrf.mxu2  ;;  %v1046_v0 = vsel %vm896_vm10, %v2880_v61, -inf }
 0x1b3   : > { %v894_v8 = vmul.f32 0.28867513, %v884_v6 }
 0x1b5   : > { %v906_v10 = vsel %vm896_vm10, %v894_v8, -inf }
 0x1b6   : > { %907 = vmax.xlane.f32.xlu1 %v906_v10 }
 0x1b7   : > { %v2853_v9 = vpop.f32.mrf.mxu0 }
 0x1ba   : > { %v1154_v12 = vpop.f32.mrf.mxu2 }
 0x1bb   : > { %v2882_v62 = vmul.f32 0.28867513, %v1154_v12 }
 0x1bd   : > { %v1173_v50 = vsel %vm896_vm10, %v2882_v62, -inf }
 0x1bf   : > { %v1292_v13 = vpop.f32.mrf.mxu0 }
 0x1c0   : > { %v2893_v2 = vmul.f32 0.28867513, %v1292_v13 }
 0x1c2   : > { %v1156_v14 = vpop.f32.mrf.mxu2 }
 0x1c7   : > { %v2856_v15 = vpop.f32.mrf.mxu0 }
 0x1ca   : > { %v1159_v17 = vpop.f32.mrf.mxu2 }
 0x1cb   : > { %v2901_v5 = vmul.f32 0.28867513, %v1159_v17 }
 0x1cd   : > { %v1179_v6 = vsel %vm896_vm10, %v2901_v5, -inf }
 0x1cf   : > { %v2858_v18 = vpop.f32.mrf.mxu0 }
 0x1d2   : > { %v2860_v19 = vpop.f32.mrf.mxu2 }
 0x1d7   : > { %v2862_v20 = vpop.f32.mrf.mxu0 }
 0x1da   : > { %v2864_v21 = vpop.f32.mrf.mxu2 }
 0x1df   : > { %v1302_v22 = vpop.f32.mrf.mxu0 }
 0x1e2   : > { %v1166_v23 = vpop.f32.mrf.mxu2 }
 0x211   : > { %v899_v24 = vpop.xlane.xlu0 %898  ;;  %v911_v27 = vpop.xlane.xlu2 %910 }
 0x212   : > { %v912_v25 = vsub.f32 %v891_v54, %v899_v24  ;;  %v916_v30 = vsub.f32 %v895_v56, %v911_v27  ;;  %v1043_v56 = vsel %vm896_vm10, %v2874_v53, -inf }
 0x214   : > { %v917_v26 = vmul.f32 1.442695, %v912_v25  ;;  %v925_v36 = vmul.f32 1.442695, %v916_v30 }
 0x216   : > { %2379 = vpow2.f32 %v917_v26 }
 0x219   : > { %v902_v28 = vpop.xlane.xlu0 %901 }
 0x21a   : > { %v913_v29 = vsub.f32 %v892_v63, %v902_v28  ;;  %v2885_v63 = vmul.f32 0.28867513, %v2847_v58  ;;  %v1312_v58 = vsel %vm896_vm10, %v2893_v2, -inf }
 0x21c   : > { %v919_v33 = vmul.f32 1.442695, %v913_v29  ;;  %v2380_v34 = vpop.eup %2379  ;;  %v1040_v1 = vsel %vm896_vm10, %v2885_v63, -inf }
 0x21d   : > { %v927_v35 = vsel %vm896_vm10, %v2380_v34, 0.0 }
 0x21e   : > { %2381 = vpow2.f32 %v919_v33  ;;  %928 = vadd.xlane.f32.xlu2 %v927_v35 }
 0x21f   : > { %2383 = vpow2.f32 %v925_v36 }
 0x221   : > { %v905_v37 = vpop.xlane.xlu1 %904 }
 0x222   : > { %v914_v38 = vsub.f32 %v893_v3, %v905_v37  ;;  %v2895_v3 = vmul.f32 0.28867513, %v1156_v14 }
 0x224   : > { %v2382_v39 = vpop.eup %2381  ;;  %v921_v40 = vmul.f32 1.442695, %v914_v38  ;;  %v1176_v4 = vsel %vm896_vm10, %v2895_v3, -inf }
 0x225   : > { %v930_v41 = vsel %vm896_vm10, %v2382_v39, 0.0  ;;  %v2868_v44 = vpop.eup %2383 }
 0x226   : > { %2385 = vpow2.f32 %v921_v40  ;;  %931 = vadd.xlane.f32.xlu0 %v930_v41  ;;  %v939_v48 = vsel %vm896_vm10, %v2868_v44, 0.0 }
 0x229   : > { %v908_v42 = vpop.xlane.xlu1 %907 }
 0x22a   : > { %v915_v45 = vsub.f32 %v894_v8, %v908_v42  ;;  %v2906_v8 = vmul.f32 0.28867513, %v2858_v18 }
 0x22c   : > { %v2386_v46 = vpop.eup %2385  ;;  %v923_v47 = vmul.f32 1.442695, %v915_v45  ;;  %v1318_v10 = vsel %vm896_vm10, %v2906_v8, -inf }
 0x22d   : > { %v933_v49 = vsel %vm896_vm10, %v2386_v46, 0.0 }
 0x22e   : > { %2387 = vpow2.f32 %v923_v47  ;;  %940 = vadd.xlane.f32.xlu0 %v939_v48  ;;  %934 = vadd.xlane.f32.xlu1 %v933_v49 }
 0x234   : > { %v2388_v54 = vpop.eup %2387 }
 0x235   : > { %v936_v60 = vsel %vm896_vm10, %v2388_v54, 0.0 }
 0x236   : > { %1044 = vmax.xlane.f32.xlu0 %v1043_v56  ;;  %1038 = vmax.xlane.f32.xlu1 %v1037_v59 }
 0x237   : > { %937 = vadd.xlane.f32.xlu2 %v936_v60 }
 0x23e   : > { %1174 = vmax.xlane.f32.xlu0 %v1173_v50  ;;  %1047 = vmax.xlane.f32.xlu1 %v1046_v0 }
 0x23f   : > { %1041 = vmax.xlane.f32.xlu2 %v1040_v1 }
 0x246   : > { %1313 = vmax.xlane.f32.xlu0 %v1312_v58  ;;  %1177 = vmax.xlane.f32.xlu1 %v1176_v4 }
 0x24e   : > { %1180 = vmax.xlane.f32.xlu0 %v1179_v6 }
 0x256   : > { %1319 = vmax.xlane.f32.xlu0 %v1318_v10 }
 0x291   : > { %v929_v12 = vpop.xlane.xlu2 %928 }
 0x292   : > { %2389 = vrcp.f32 %v929_v12  ;;  %v1304_v12 = vmul.f32 0.28867513, %v2853_v9 }
 0x298   : > { %v2390_v14 = vpop.eup %2389 }
 0x299   : > { %v932_v13 = vpop.xlane.xlu0 %931  ;;  %v947_v23 = vmul.f32 %v2390_v14, %v2380_v34 }
 0x29a   : > { %2391 = vrcp.f32 %v932_v13 }
 0x2a0   : > { %v2392_v22 = vpop.eup %2391 }
 0x2a1   : > { %v948_v17 = vmul.f32 %v2392_v22, %v2382_v39  ;;  %v935_v24 = vpop.xlane.xlu1 %934  ;;  %v941_v26 = vpop.xlane.xlu0 %940  ;;  %v1309_v22 = vsel %vm896_vm10, %v1304_v12, -inf }
 0x2a2   : > { %2393 = vrcp.f32 %v935_v24 }
 0x2a3   : > { %v952_v25 = vpack.c.bf16 %v948_v17, %v947_v23 }
 0x2a5   : > { %2151 = vmatmul.msk.bf16.vlgmr.msrb.gmra.mxu3 %vm896_vm10, %v952_v25 }
 0x2a6   : > { %1245 = vmatpush.bf16.msrb.mxu3 %v2782_v51 }
 0x2a8   : > { %v2394_v30 = vpop.eup %2393 }
 0x2a9   : > { %v1039_v18 = vpop.xlane.xlu1 %1038  ;;  %v1045_v33 = vpop.xlane.xlu0 %1044  ;;  %v949_v35 = vmul.f32 %v2394_v30, %v2386_v46 }
 0x2aa   : > { %1246 = vmatpush.bf16.msrb.mxu3 %v2785_v55  ;;  %v938_v27 = vpop.xlane.xlu2 %937  ;;  %v1052_v28 = vsub.f32 %v1032_v52, %v1039_v18  ;;  %v1054_v51 = vsub.f32 %v2874_v53, %v1045_v33 }
 0x2ab   : > { %2395 = vrcp.f32 %v938_v27 }
 0x2ac   : > { %v1057_v29 = vmul.f32 1.442695, %v1052_v28  ;;  %v1061_v39 = vmul.f32 1.442695, %v1054_v51 }
 0x2ae   : > { %1247 = vmatpush.bf16.msrb.mxu3 %v2788_v57  ;;  %2397 = vpow2.f32 %v1057_v29  ;;  %v2921_v57 = vmul.f32 0.28867513, %v2860_v19 }
 0x2af   : > { %2399 = vrcp.f32 %v941_v26  ;;  %v2958_v26 = vmul.f32 0.28867513, %v2856_v15 }
 0x2b0   : > { %2401 = vpow2.f32 %v1061_v39  ;;  %v1182_v45 = vsel %vm896_vm10, %v2921_v57, -inf }
 0x2b1   : > { %v2396_v34 = vpop.eup %2395  ;;  %v1175_v40 = vpop.xlane.xlu0 %1174  ;;  %v1315_v18 = vsel %vm896_vm10, %v2958_v26, -inf }
 0x2b2   : > { %v950_v36 = vmul.f32 %v2396_v34, %v2388_v54  ;;  %v1188_v42 = vsub.f32 %v2882_v62, %v1175_v40  ;;  %v1042_v1 = vpop.xlane.xlu2 %1041  ;;  %v1048_v14 = vpop.xlane.xlu1 %1047 }
 0x2b3   : > { %v1053_v6 = vsub.f32 %v2885_v63, %v1042_v1  ;;  %v1055_v17 = vsub.f32 %v2880_v61, %v1048_v14 }
 0x2b4   : > { %v953_v37 = vpack.c.bf16 %v950_v36, %v949_v35  ;;  %v2914_v38 = vpop.eup %2397  ;;  %v1193_v47 = vmul.f32 1.442695, %v1188_v42 }
 0x2b5   : > { %v1067_v55 = vsel %vm896_vm10, %v2914_v38, 0.0  ;;  %v2400_v41 = vpop.eup %2399  ;;  %v1059_v10 = vmul.f32 1.442695, %v1053_v6  ;;  %v1063_v25 = vmul.f32 1.442695, %v1055_v17 }
 0x2b6   : > { %2152 = vmatmul.msk.bf16.gmra.mxu3 %vm896_vm10, %v953_v37  ;;  %1068 = vadd.xlane.f32.xlu1 %v1067_v55  ;;  %v951_v46 = vmul.f32 %v2400_v41, %v2868_v44  ;;  %v2927_v48 = vpop.eup %2401  ;;  %2403 = vpow2.f32 %v1193_v47  ;;  %v1005_v44 = vmul.f32 %v2814_v16, %v2803_v7 }
 0x2b7   : > { %v1073_v19 = vsel %vm896_vm10, %v2927_v48, 0.0  ;;  %2405 = vpow2.f32 %v1059_v10 }
 0x2b8   : > { %v954_v49 = vpack.c.bf16 %v951_v46, %v951_v46  ;;  %v1008_v54 = vpack.c.bf16 %v1005_v44, %v1005_v44  ;;  %2407 = vpow2.f32 %v1063_v25 }
 0x2b9   : > { %v1314_v29 = vpop.xlane.xlu0 %1313 }
 0x2ba   : > { %v1178_v63 = vpop.xlane.xlu1 %1177  ;;  %v1325_v30 = vsub.f32 %v2893_v2, %v1314_v29 }
 0x2bb   : > { %v1189_v9 = vsub.f32 %v2895_v3, %v1178_v63 }
 0x2bc   : > { %v2932_v52 = vpop.eup %2403  ;;  %v1331_v15 = vmul.f32 1.442695, %v1325_v30 }
 0x2bd   : > { %v1203_v53 = vsel %vm896_vm10, %v2932_v52, 0.0  ;;  %v2952_v23 = vpop.eup %2405  ;;  %v1195_v28 = vmul.f32 1.442695, %v1189_v9 }
 0x2be   : > { %1183 = vmax.xlane.f32.xlu1 %v1182_v45  ;;  %v1070_v24 = vsel %vm896_vm10, %v2952_v23, 0.0  ;;  %v2963_v61 = vpop.eup %2407 }
 0x2bf   : > { %2409 = vpow2.f32 %v1195_v28  ;;  %v1076_v33 = vsel %vm896_vm10, %v2963_v61, 0.0 }
 0x2c0   : > { %2411 = vpow2.f32 %v1331_v15 }
 0x2c1   : > { %v1181_v42 = vpop.xlane.xlu0 %1180 }
 0x2c5   : > { %v2968_v35 = vpop.eup %2409 }
 0x2c6   : > { %2153 = vmatmul.msk.bf16.gmra.mxu3 %vm896_vm10, %v954_v49  ;;  %1074 = vadd.xlane.f32.xlu1 %v1073_v19  ;;  %v1206_v36 = vsel %vm896_vm10, %v2968_v35, 0.0  ;;  %v2973_v51 = vpop.eup %2411  ;;  %v1190_v49 = vsub.f32 %v2901_v5, %v1181_v42 }
 0x2c7   : > { %v1342_v2 = vsel %vm896_vm10, %v2973_v51, 0.0 }
 0x2c8   : > { %v1197_v44 = vmul.f32 1.442695, %v1190_v49 }
 0x2ce   : > { %1204 = vadd.xlane.f32.xlu1 %v1203_v53 }
 0x2d6   : > { %1027 = vmatmul.bf16.vlgmr.msra.gmra.mxu3 %v1008_v54  ;;  %v2987_v54 = vmul.f32 0.28867513, %v2864_v21 }
 0x2d8   : > { %v1185_v5 = vsel %vm896_vm10, %v2987_v54, -inf }
 0x328   : > { %v2938_v56 = vpop.f32.mrf.mxu3 }
 0x329   : > { %v1069_v27 = vpop.xlane.xlu1 %1068 }
 0x330   : > { %v2940_v59 = vpop.f32.mrf.mxu3 }
 0x331   : > { %v1184_v34 = vpop.xlane.xlu1 %1183 }
 0x332   : > { %v1191_v3 = vsub.f32 %v2921_v57, %v1184_v34 }
 0x334   : > { %v1199_v37 = vmul.f32 1.442695, %v1191_v3 }
 0x336   : > { %2413 = vpow2.f32 %v1199_v37 }
 0x339   : > { %v2942_v60 = vpop.f32.mrf.mxu3 }
 0x33c   : > { %v2977_v55 = vpop.eup %2413 }
 0x33d   : > { %v1212_v39 = vsel %vm896_vm10, %v2977_v55, 0.0 }
 0x341   : > { %v2944_v62 = vpop.f32.mrf.mxu3 }
 0x349   : > { %v2946_v50 = vpop.f32.mrf.mxu3 }
 0x351   : > { %v989_v0 = vpop.f32.mrf.mxu3 }
 0x352   : > { %v1320_v0 = vpop.xlane.xlu0 %1319 }
 0x359   : > { %v1028_v58 = vpop.f32.mrf.mxu3 }
 0x35a   : > { %v1036_v4 = vmul.f32 0.28867513, %v1028_v58 }
 0x35c   : > { %v1049_v7 = vsel %vm896_vm10, %v1036_v4, -inf }
 0x35d   : > { %1050 = vmax.xlane.f32.xlu2 %v1049_v7 }
 0x361   : > { %v1030_v13 = vpop.f32.mrf.mxu3 }
 0x365   : > { %1310 = vmax.xlane.f32.xlu2 %v1309_v22 }
 0x36d   : > { %1071 = vadd.xlane.f32.xlu2 %v1070_v24  ;;  %v1075_v24 = vpop.xlane.xlu1 %1074 }
 0x375   : > { %1316 = vmax.xlane.f32.xlu2 %v1315_v18  ;;  %v1205_v18 = vpop.xlane.xlu1 %1204 }
 0x37d   : > { %1077 = vadd.xlane.f32.xlu2 %v1076_v33 }
 0x385   : > { %1207 = vadd.xlane.f32.xlu2 %v1206_v36 }
 0x38d   : > { %1343 = vadd.xlane.f32.xlu2 %v1342_v2 }
 0x395   : > { %1213 = vadd.xlane.f32.xlu2 %v1212_v39 }
 0x3d0   : > { %v1051_v40 = vpop.xlane.xlu2 %1050 }
 0x3d1   : > { %v1056_v57 = vsub.f32 %v1036_v4, %v1051_v40  ;;  %v1327_v4 = vsub.f32 %v2906_v8, %v1320_v0 }
 0x3d3   : > { %v1065_v41 = vmul.f32 1.442695, %v1056_v57  ;;  %v1335_v21 = vmul.f32 1.442695, %v1327_v4 }
 0x3d5   : > { %2415 = vpow2.f32 %v1065_v41 }
 0x3d8   : > { %v1311_v45 = vpop.xlane.xlu2 %1310 }
 0x3d9   : > { %v1324_v46 = vsub.f32 %v1304_v12, %v1311_v45  ;;  %v2997_v12 = vmul.f32 0.28867513, %v2862_v20 }
 0x3db   : > { %v2981_v47 = vpop.eup %2415  ;;  %v1329_v19 = vmul.f32 1.442695, %v1324_v46  ;;  %v1321_v9 = vsel %vm896_vm10, %v2997_v12, -inf }
 0x3dc   : > { %v1079_v53 = vsel %vm896_vm10, %v2981_v47, 0.0 }
 0x3dd   : > { %2417 = vpow2.f32 %v1329_v19  ;;  %1080 = vadd.xlane.f32.xlu0 %v1079_v53 }
 0x3de   : > { %2419 = vrcp.f32 %v1069_v27 }
 0x3e0   : > { %v1072_v1 = vpop.xlane.xlu2 %1071 }
 0x3e1   : > { %2421 = vrcp.f32 %v1072_v1 }
 0x3e2   : > { %2423 = vpow2.f32 %v1197_v44 }
 0x3e3   : > { %v2989_v58 = vpop.eup %2417  ;;  %2425 = vpow2.f32 %v1335_v21 }
 0x3e4   : > { %v1339_v6 = vsel %vm896_vm10, %v2989_v58, 0.0  ;;  %v2420_v7 = vpop.eup %2419 }
 0x3e5   : > { %1186 = vmax.xlane.f32.xlu0 %v1185_v5  ;;  %1340 = vadd.xlane.f32.xlu1 %v1339_v6  ;;  %v1087_v13 = vmul.f32 %v2420_v7, %v2914_v38 }
 0x3e7   : > { %v2422_v10 = vpop.eup %2421 }
 0x3e8   : > { %v1088_v14 = vmul.f32 %v2422_v10, %v2952_v23  ;;  %v1317_v22 = vpop.xlane.xlu2 %1316  ;;  %v3001_v8 = vpop.eup %2423 }
 0x3e9   : > { %v1326_v17 = vsub.f32 %v2958_v26, %v1317_v22  ;;  %v1209_v20 = vsel %vm896_vm10, %v3001_v8, 0.0  ;;  %v3009_v23 = vpop.eup %2425 }
 0x3ea   : > { %v1092_v63 = vpack.c.bf16 %v1088_v14, %v1087_v13  ;;  %v1348_v28 = vsel %vm896_vm10, %v3009_v23, 0.0 }
 0x3eb   : > { %v1333_v25 = vmul.f32 1.442695, %v1326_v17 }
 0x3ec   : > { %2154 = vmatmul.msk.bf16.vlgmr.msra.gmra.mxu1 %vm896_vm10, %v1092_v63 }
 0x3ed   : > { %2427 = vpow2.f32 %v1333_v25  ;;  %1322 = vmax.xlane.f32.xlu0 %v1321_v9  ;;  %1210 = vadd.xlane.f32.xlu1 %v1209_v20  ;;  %v2293_v20 = vld [vmem:[%s3316_s7 + $0x38] sm:$0xff] }
 0x3ee   : > { %2429 = vrcp.f32 %v1075_v24  ;;  %1480 = vmatpush.bf16.msrb.mxu2 %v2293_v20 }
 0x3f0   : > { %v1078_v38 = vpop.xlane.xlu2 %1077 }
 0x3f1   : > { %2431 = vrcp.f32 %v1078_v38  ;;  %v2292_v38 = vld [vmem:[%s3316_s7 + $0x30] sm:$0xff] }
 0x3f2   : > { %2433 = vrcp.f32 %v1205_v18  ;;  %1481 = vmatpush.bf16.msrb.mxu2 %v2292_v38 }
 0x3f3   : > { %v3011_v26 = vpop.eup %2427 }
 0x3f4   : > { %v1345_v27 = vsel %vm896_vm10, %v3011_v26, 0.0  ;;  %v2430_v29 = vpop.eup %2429 }
 0x3f5   : > { %1346 = vadd.xlane.f32.xlu0 %v1345_v27  ;;  %1349 = vadd.xlane.f32.xlu1 %v1348_v28  ;;  %v1089_v15 = vmul.f32 %v2430_v29, %v2927_v48  ;;  %v2289_v28 = vld [vmem:[%s3316_s7 + $0x18] sm:$0xff]  ;;  %v2288_v29 = vld [vmem:[%s3316_s7 + $0x10] sm:$0xff] }
 0x3f7   : > { %v2432_v30 = vpop.eup %2431 }
 0x3f8   : > { %v1208_v33 = vpop.xlane.xlu2 %1207  ;;  %v1090_v34 = vmul.f32 %v2432_v30, %v2963_v61  ;;  %v2434_v36 = vpop.eup %2433  ;;  %v2287_v30 = vld [vmem:[%s3316_s7 + $0x8] sm:$0xff] }
 0x3f9   : > { %2435 = vrcp.f32 %v1208_v33  ;;  %v1223_v2 = vmul.f32 %v2434_v36, %v2932_v52  ;;  %v995_v36 = vmul.f32 %v2806_v11, %v2946_v50 }
 0x3fa   : > { %v1093_v3 = vpack.c.bf16 %v1090_v34, %v1089_v15  ;;  %v2286_v15 = vld [vmem:[%s3316_s7] sm:$0xff] }
 0x3fc   : > { %2155 = vmatmul.msk.bf16.gmra.mxu1 %vm896_vm10, %v1093_v3 }
 0x3ff   : > { %v2436_v37 = vpop.eup %2435 }
 0x400   : > { %v1224_v39 = vmul.f32 %v2436_v37, %v2968_v35  ;;  %v1344_v41 = vpop.xlane.xlu2 %1343 }
 0x402   : > { %v1228_v40 = vpack.c.bf16 %v1224_v39, %v1223_v2 }
 0x404   : > { %2157 = vmatmul.msk.bf16.vlgmr.msrb.gmra.mxu3 %vm896_vm10, %v1228_v40 }
 0x408   : > { %v1214_v53 = vpop.xlane.xlu2 %1213 }
 0x450   : > { %v1081_v57 = vpop.xlane.xlu0 %1080 }
 0x451   : > { %2437 = vrcp.f32 %v1081_v57 }
 0x457   : > { %v2438_v42 = vpop.eup %2437 }
 0x458   : > { %v1187_v48 = vpop.xlane.xlu0 %1186  ;;  %v1341_v45 = vpop.xlane.xlu1 %1340  ;;  %v1091_v61 = vmul.f32 %v2438_v42, %v2981_v47 }
 0x459   : > { %v1192_v46 = vsub.f32 %v2987_v54, %v1187_v48  ;;  %2439 = vrcp.f32 %v1341_v45 }
 0x45a   : > { %v1094_v49 = vpack.c.bf16 %v1091_v61, %v1091_v61 }
 0x45b   : > { %v1201_v19 = vmul.f32 1.442695, %v1192_v46 }
 0x45c   : > { %2156 = vmatmul.msk.bf16.gmra.mxu1 %vm896_vm10, %v1094_v49 }
 0x45d   : > { %2441 = vpow2.f32 %v1201_v19 }
 0x45e   : > { %2443 = vrcp.f32 %v1344_v41 }
 0x45f   : > { %2445 = vrcp.f32 %v1214_v53  ;;  %v2440_v0 = vpop.eup %2439 }
 0x460   : > { %v1323_v52 = vpop.xlane.xlu0 %1322  ;;  %v1211_v35 = vpop.xlane.xlu1 %1210  ;;  %v1359_v6 = vmul.f32 %v2440_v0, %v2989_v58 }
 0x461   : > { %v1328_v44 = vsub.f32 %v2997_v12, %v1323_v52  ;;  %2447 = vrcp.f32 %v1211_v35  ;;  %v991_v52 = vmul.f32 %v2806_v11, %v2938_v56  ;;  %v992_v35 = vmul.f32 %v2806_v11, %v2940_v59 }
 0x463   : > { %v2442_v1 = vpop.eup %2441  ;;  %v1337_v4 = vmul.f32 1.442695, %v1328_v44 }
 0x464   : > { %v2444_v47 = vpop.eup %2443  ;;  %v1215_v54 = vsel %vm896_vm10, %v2442_v1, 0.0 }
 0x465   : > { %v2446_v5 = vpop.eup %2445  ;;  %2449 = vpow2.f32 %v1337_v4  ;;  %1216 = vadd.xlane.f32.xlu2 %v1215_v54  ;;  %v1360_v10 = vmul.f32 %v2444_v47, %v2973_v51 }
 0x466   : > { %v1226_v13 = vmul.f32 %v2446_v5, %v2977_v55 }
 0x467   : > { %v2448_v7 = vpop.eup %2447  ;;  %v1364_v14 = vpack.c.bf16 %v1360_v10, %v1359_v6 }
 0x468   : > { %v1225_v21 = vmul.f32 %v2448_v7, %v3001_v8  ;;  %v1347_v12 = vpop.xlane.xlu0 %1346  ;;  %v1350_v22 = vpop.xlane.xlu1 %1349 }
 0x469   : > { %2451 = vrcp.f32 %v1347_v12  ;;  %v1113_v9 = vpop.f32.mrf.mxu1 }
 0x46a   : > { %v1229_v17 = vpack.c.bf16 %v1226_v13, %v1225_v21  ;;  %2453 = vrcp.f32 %v1350_v22  ;;  %v1127_v53 = vmul.f32 %v2814_v16, %v1113_v9 }
 0x46b   : > { %v2450_v24 = vpop.eup %2449 }
 0x46c   : > { %2158 = vmatmul.msk.bf16.gmra.mxu3 %vm896_vm10, %v1229_v17  ;;  %2160 = vmatmul.msk.bf16.vlgmr.msrb.gmra.mxu1 %vm896_vm10, %v1364_v14  ;;  %v1351_v63 = vsel %vm896_vm10, %v2450_v24, 0.0  ;;  %v993_v17 = vmul.f32 %v2806_v11, %v2942_v60 }
 0x46d   : > { %1352 = vadd.xlane.f32.xlu0 %v1351_v63 }
 0x46f   : > { %v2452_v58 = vpop.eup %2451 }
 0x470   : > { %v2454_v51 = vpop.eup %2453  ;;  %v1361_v8 = vmul.f32 %v2452_v58, %v3011_v26  ;;  %v2291_v26 = vld [vmem:[%s3316_s7 + $0x28] sm:$0xff] }
 0x471   : > { %v1362_v55 = vmul.f32 %v2454_v51, %v3009_v23  ;;  %v1115_v18 = vpop.f32.mrf.mxu1  ;;  %1482 = vmatpush.bf16.msrb.mxu2 %v2291_v26  ;;  %v2290_v23 = vld [vmem:[%s3316_s7 + $0x20] sm:$0xff] }
 0x472   : > { %v1128_v50 = vmul.f32 %v2814_v16, %v1115_v18 }
 0x473   : > { %v1365_v25 = vpack.c.bf16 %v1362_v55, %v1361_v8 }
 0x474   : > { %v1133_v4 = vadd.f32 %v1128_v50, %v992_v35 }
 0x475   : > { %1483 = vmatpush.bf16.msrb.mxu2 %v2290_v23 }
 0x479   : > { %v1118_v27 = vpop.f32.mrf.mxu1  ;;  %1484 = vmatpush.bf16.msrb.mxu2 %v2289_v28 }
 0x47a   : > { %v1129_v14 = vmul.f32 %v2814_v16, %v1118_v27 }
 0x47c   : > { %2161 = vmatmul.msk.bf16.gmra.mxu1 %vm896_vm10, %v1365_v25  ;;  %v1134_v51 = vadd.f32 %v1129_v14, %v993_v17 }
 0x47d   : > { %1485 = vmatpush.bf16.msrb.mxu2 %v2288_v29 }
 0x481   : > { %v1120_v33 = vpop.f32.mrf.mxu1  ;;  %1486 = vmatpush.bf16.msrb.mxu2 %v2287_v30 }
 0x482   : > { %v1130_v22 = vmul.f32 %v2814_v16, %v1120_v33 }
 0x485   : > { %1487 = vmatpush.bf16.msrb.mxu2 %v2286_v15  ;;  %v2372_v15 = vld [vmem:[%s3317_s8] ss:$0 sm:$0xff] }
 0x487   : > { %v1249_v40 = vpop.f32.mrf.mxu3 }
 0x488   : > { %v1263_v44 = vmul.f32 %v2828_v31, %v1249_v40 }
 0x48f   : > { %v1251_v46 = vpop.f32.mrf.mxu3 }
 0x490   : > { %v1264_v0 = vmul.f32 %v2828_v31, %v1251_v46 }
 0x492   : > { %v1269_v7 = vadd.f32 %v1264_v0, %v1133_v4  ;;  %v2483_v0 = vld [vmem:[%s2727_s1 + $0x20] sm:$0xff] }
 0x4d8   : > { %v1217_v34 = vpop.xlane.xlu2 %1216 }
 0x4d9   : > { %2455 = vrcp.f32 %v1217_v34  ;;  %v1123_v3 = vpop.f32.mrf.mxu1 }
 0x4da   : > { %v1131_v37 = vmul.f32 %v2814_v16, %v1123_v3 }
 0x4dc   : > { %v1136_v2 = vadd.f32 %v1131_v37, %v995_v36  ;;  %v2479_v36 = vld [vmem:[%s2727_s1] sm:$0xff] }
 0x4df   : > { %v2456_v39 = vpop.eup %2455 }
 0x4e0   : > { %v1353_v57 = vpop.xlane.xlu0 %1352  ;;  %v1227_v41 = vmul.f32 %v2456_v39, %v2442_v1  ;;  %v1132_v1 = vadd.f32 %v1127_v53, %v991_v52  ;;  %v2480_v39 = vld [vmem:[%s2727_s1 + $0x8] sm:$0xff] }
 0x4e1   : > { %2457 = vrcp.f32 %v1353_v57  ;;  %v1125_v42 = vpop.f32.mrf.mxu1 }
 0x4e2   : > { %v1230_v48 = vpack.c.bf16 %v1227_v41, %v1227_v41  ;;  %v1268_v6 = vadd.f32 %v1263_v44, %v1132_v1 }
 0x4e4   : > { %2159 = vmatmul.msk.bf16.gmra.mxu3 %vm896_vm10, %v1230_v48  ;;  %v2481_v48 = vld [vmem:[%s2727_s1 + $0x10] sm:$0xff] }
 0x4e7   : > { %v2458_v45 = vpop.eup %2457 }
 0x4e8   : > { %v1363_v61 = vmul.f32 %v2458_v45, %v2450_v24  ;;  %v994_v24 = vmul.f32 %v2806_v11, %v2944_v62 }
 0x4e9   : > { %v1385_v49 = vpop.f32.mrf.mxu1 }
 0x4ea   : > { %v1366_v19 = vpack.c.bf16 %v1363_v61, %v1363_v61  ;;  %v1399_v47 = vmul.f32 %v2831_v32, %v1385_v49  ;;  %v1135_v8 = vadd.f32 %v1130_v22, %v994_v24 }
 0x4ec   : > { %2162 = vmatmul.msk.bf16.gmra.mxu1 %vm896_vm10, %v1366_v19  ;;  %v1404_v21 = vadd.f32 %v1399_v47, %v1268_v6  ;;  %v2482_v19 = vld [vmem:[%s2727_s1 + $0x18] sm:$0xff]  ;;  %s2504_s1 = scalar_lea.hbm %s3326_s17, 80 }
 0x4ed   : > { %p2506_p1 = scmp.lt.s32.totalorder %s2504_s1, %s2500_s24 }
 0x4ef   : > { %v1254_v54 = vpop.f32.mrf.mxu3  ;;  %p2507_p2 = por %p2506_p1, %p2505_p0 }
 0x4f0   : > { %v1265_v63 = vmul.f32 %v2828_v31, %v1254_v54 }
 0x4f1   : > { %v1387_v5 = vpop.f32.mrf.mxu1  ;;  %p2508_p3 = pnand %p2507_p2, %p2503_p13 }
 0x4f2   : > { %v1400_v10 = vmul.f32 %v2831_v32, %v1387_v5  ;;  %v1270_v9 = vadd.f32 %v1265_v63, %v1134_v51 }
 0x4f4   : > { %v1405_v13 = vadd.f32 %v1400_v10, %v1269_v7 }
 0x4f6   : > { %v1409_v56 = vpack.c.bf16 %v1405_v13, %v1404_v21 }
 0x4f7   : > { %v1256_v59 = vpop.f32.mrf.mxu3 }
 0x4f8   : > { %1488 = vmatmul.bf16.vlgmr.msrb.gmra.mxu2 %v1409_v56  ;;  %v1266_v58 = vmul.f32 %v2828_v31, %v1256_v59 }
 0x4f9   : > { %v1390_v12 = vpop.f32.mrf.mxu1 }
 0x4fa   : > { %v1401_v55 = vmul.f32 %v2831_v32, %v1390_v12  ;;  %v1271_v20 = vadd.f32 %v1266_v58, %v1135_v8 }
 0x4fc   : > { %v1406_v16 = vadd.f32 %v1401_v55, %v1270_v9  ;;  %v2300_v9 = vld [vmem:[%s3320_s11 + $0x30] sm:$0xff] }
 0x501   : > { %v1392_v25 = vpop.f32.mrf.mxu1 }
 0x502   : > { %v1402_v38 = vmul.f32 %v2831_v32, %v1392_v25  ;;  %v2301_v25 = vld [vmem:[%s3320_s11 + $0x38] sm:$0xff] }
 0x503   : > { %1707 = vmatpush.bf16.msra.mxu3 %v2301_v25 }
 0x504   : > { %v1407_v18 = vadd.f32 %v1402_v38, %v1271_v20  ;;  %v2299_v20 = vld [vmem:[%s3320_s11 + $0x28] sm:$0xff]  ;;  %v2298_v38 = vld [vmem:[%s3320_s11 + $0x20] sm:$0xff] }
 0x506   : > { %v1410_v60 = vpack.c.bf16 %v1407_v18, %v1406_v16  ;;  %v2297_v16 = vld [vmem:[%s3320_s11 + $0x18] sm:$0xff]  ;;  %v2296_v18 = vld [vmem:[%s3320_s11 + $0x10] sm:$0xff] }
 0x507   : > { %1708 = vmatpush.bf16.msra.mxu3 %v2300_v9 }
 0x508   : > { %1493 = vmatmul.bf16.gmra.mxu2 %v1410_v60 }
 0x50b   : > { %1709 = vmatpush.bf16.msra.mxu3 %v2299_v20 }
 0x50f   : > { %1710 = vmatpush.bf16.msra.mxu3 %v2298_v38 }
 0x513   : > { %1711 = vmatpush.bf16.msra.mxu3 %v2297_v16 }
 0x517   : > { %1712 = vmatpush.bf16.msra.mxu3 %v2296_v18 }
 0x567   : > { %v1259_v26 = vpop.f32.mrf.mxu3 }
 0x568   : > { %v1267_v11 = vmul.f32 %v2828_v31, %v1259_v26 }
 0x569   : > { %v1395_v62 = vpop.f32.mrf.mxu1 }
 0x56a   : > { %v1272_v23 = vadd.f32 %v1267_v11, %v1136_v2  ;;  %v1403_v27 = vmul.f32 %v2831_v32, %v1395_v62  ;;  %v2295_v62 = vld [vmem:[%s3320_s11 + $0x8] sm:$0xff] }
 0x56b   : > { %1713 = vmatpush.bf16.msra.mxu3 %v2295_v62 }
 0x56c   : > { %v1408_v28 = vadd.f32 %v1403_v27, %v1272_v23 }
 0x56e   : > { %v1411_v29 = vpack.c.bf16 %v1408_v28, %v1408_v28 }
 0x56f   : > { %v1261_v30 = vpop.f32.mrf.mxu3 }
 0x570   : > { %1498 = vmatmul.bf16.gmra.mxu2 %v1411_v29 }
 0x571   : > { %v1397_v33 = vpop.f32.mrf.mxu1 }
 0x572   : > { %v2294_v33 = vld [vmem:[%s3320_s11] sm:$0xff] }
 0x573   : > { %1714 = vmatpush.bf16.msra.mxu3 %v2294_v33 }
 0x57b   : > { %v1489_v34 = vpop.f32.mrf.mxu2 }
 0x57c   : > { %v1490_v3 = vadd.f32 %v2372_v15, %v1489_v34 }
 0x57e   : > { %v1503_v37 = vadd.f32 %v2479_v36, %v1490_v3 }
 0x580   : > { %v1508_v31 = vmul.f32 %v2777_v43, %v1503_v37 }
 0x582   : > { %1513 = vadd.xlane.f32.xlu1 %v1508_v31 }
 0x583   : > { %v1491_v2 = vpop.f32.mrf.mxu2 }
 0x584   : > { %v1492_v32 = vadd.f32 %v2372_v15, %v1491_v2 }
 0x586   : > { %v1504_v40 = vadd.f32 %v2480_v39, %v1492_v32 }
 0x588   : > { %v1509_v57 = vmul.f32 %v2777_v43, %v1504_v40 }
 0x58a   : > { %1515 = vadd.xlane.f32.xlu2 %v1509_v57 }
 0x58b   : > { %v1494_v41 = vpop.f32.mrf.mxu2 }
 0x58c   : > { %v1495_v42 = vadd.f32 %v2372_v15, %v1494_v41 }
 0x58e   : > { %v1505_v45 = vadd.f32 %v2481_v48, %v1495_v42 }
 0x590   : > { %v1510_v61 = vmul.f32 %v2777_v43, %v1505_v45 }
 0x592   : > { %1517 = vadd.xlane.f32.xlu0 %v1510_v61 }
 0x593   : > { %v1496_v46 = vpop.f32.mrf.mxu2 }
 0x594   : > { %v1497_v49 = vadd.f32 %v2372_v15, %v1496_v46 }
 0x596   : > { %v1506_v53 = vadd.f32 %v2482_v19, %v1497_v49 }
 0x598   : > { %v1511_v50 = vmul.f32 %v2777_v43, %v1506_v53 }
 0x59a   : > { %1519 = vadd.xlane.f32.xlu1 %v1511_v50 }
 0x5f3   : > { %v1499_v52 = vpop.f32.mrf.mxu2 }
 0x5f4   : > { %v1500_v35 = vadd.f32 %v2372_v15, %v1499_v52 }
 0x5f5   : > { %v1514_v44 = vpop.xlane.xlu1 %1513 }
 0x5f6   : > { %v1507_v1 = vadd.f32 %v2483_v0, %v1500_v35  ;;  %v1523_v4 = vmul.f32 0.020833334, %v1514_v44  ;;  %v3155_v44 = vld [vmem:[%s3318_s9] ss:$0 sm:$0xff] }
 0x5f8   : > { %v1528_v47 = vsub.f32 %v1503_v37, %v1523_v4  ;;  %v1512_v54 = vmul.f32 %v2777_v43, %v1507_v1 }
 0x5fa   : > { %1521 = vadd.xlane.f32.xlu2 %v1512_v54  ;;  %v3103_v5 = vmul.f32 %v2777_v43, %v1528_v47 }
 0x5fb   : > { %v1501_v6 = vpop.f32.mrf.mxu2 }
 0x5fc   : > { %v1538_v7 = vmul.f32 %v3103_v5, %v3103_v5 }
 0x5fd   : > { %v1516_v10 = vpop.xlane.xlu2 %1515 }
 0x5fe   : > { %v1524_v21 = vmul.f32 0.020833334, %v1516_v10  ;;  %1543 = vadd.xlane.f32.xlu0 %v1538_v7 }
 0x600   : > { %v1529_v13 = vsub.f32 %v1504_v40, %v1524_v21 }
 0x602   : > { %v3108_v56 = vmul.f32 %v2777_v43, %v1529_v13 }
 0x604   : > { %v1539_v12 = vmul.f32 %v3108_v56, %v3108_v56 }
 0x605   : > { %v1518_v59 = vpop.xlane.xlu0 %1517 }
 0x606   : > { %v1525_v14 = vmul.f32 0.020833334, %v1518_v59  ;;  %1545 = vadd.xlane.f32.xlu1 %v1539_v12 }
 0x608   : > { %v1530_v22 = vsub.f32 %v1505_v45, %v1525_v14 }
 0x60a   : > { %v3113_v17 = vmul.f32 %v2777_v43, %v1530_v22 }
 0x60c   : > { %v1540_v24 = vmul.f32 %v3113_v17, %v3113_v17 }
 0x60d   : > { %v1520_v63 = vpop.xlane.xlu1 %1519 }
 0x60e   : > { %v1526_v58 = vmul.f32 0.020833334, %v1520_v63  ;;  %1547 = vadd.xlane.f32.xlu2 %v1540_v24 }
 0x610   : > { %v1531_v51 = vsub.f32 %v1506_v53, %v1526_v58 }
 0x612   : > { %v3118_v8 = vmul.f32 %v2777_v43, %v1531_v51 }
 0x614   : > { %v1541_v55 = vmul.f32 %v3118_v8, %v3118_v8 }
 0x616   : > { %1549 = vadd.xlane.f32.xlu0 %v1541_v55 }
 0x66d   : > { %v1522_v60 = vpop.xlane.xlu2 %1521 }
 0x66e   : > { %v1527_v26 = vmul.f32 0.020833334, %v1522_v60 }
 0x670   : > { %v1532_v11 = vsub.f32 %v1507_v1, %v1527_v26 }
 0x671   : > { %v1544_v23 = vpop.xlane.xlu0 %1543 }
 0x672   : > { %v1553_v27 = vmul.f32 0.020833334, %v1544_v23  ;;  %v3144_v28 = vmul.f32 %v2777_v43, %v1532_v11 }
 0x674   : > { %v1558_v29 = vadd.f32 1e-05, %v1553_v27  ;;  %v1542_v30 = vmul.f32 %v3144_v28, %v3144_v28  ;;  %v2307_v27 = vld [vmem:[%s3322_s13 + $0x28] sm:$0xff] }
 0x676   : > { %2459 = vrsqrt.f32 %v1558_v29  ;;  %1551 = vadd.xlane.f32.xlu1 %v1542_v30  ;;  %vm1569_vm12 = vweird.f32 %v1558_v29 }
 0x679   : > { %v1546_v15 = vpop.xlane.xlu1 %1545 }
 0x67a   : > { %v1554_v34 = vmul.f32 0.020833334, %v1546_v15 }
 0x67c   : > { %v2460_v3 = vpop.eup %2459  ;;  %v1559_v36 = vadd.f32 1e-05, %v1554_v34 }
 0x67d   : > { %v1564_v37 = vmul.f32 %v2460_v3, %v1558_v29  ;;  %vm1570_vm11 = vweird.f32 %v2460_v3  ;;  %v2306_v29 = vld [vmem:[%s3322_s13 + $0x20] sm:$0xff] }
 0x67e   : > { %2461 = vrsqrt.f32 %v1559_v36  ;;  %vm1571_vm13 = vmor %vm1569_vm12, %vm1570_vm11  ;;  %vm1579_vm15 = vweird.f32 %v1559_v36 }
 0x67f   : > { %v1565_v31 = vmul.f32 %v2460_v3, %v1564_v37 }
 0x681   : > { %v1566_v2 = vmul.f32 0.5, %v1565_v31  ;;  %v1548_v32 = vpop.xlane.xlu2 %1547  ;;  %v2304_v31 = vld [vmem:[%s3322_s13 + $0x10] sm:$0xff] }
 0x682   : > { %v1555_v39 = vmul.f32 0.020833334, %v1548_v32 }
 0x683   : > { %v1567_v40 = vsub.f32 1.5, %v1566_v2 }
 0x684   : > { %v2462_v57 = vpop.eup %2461  ;;  %v1560_v41 = vadd.f32 1e-05, %v1555_v39 }
 0x685   : > { %v1568_v42 = vmul.f32 %v2460_v3, %v1567_v40  ;;  %v1574_v48 = vmul.f32 %v2462_v57, %v1559_v36  ;;  %vm1580_vm14 = vweird.f32 %v2462_v57  ;;  %v2303_v40 = vld [vmem:[%s3322_s13 + $0x8] sm:$0xff] }
 0x686   : > { %2463 = vrsqrt.f32 %v1560_v41  ;;  %vm1581_vm0 = vmor %vm1579_vm15, %vm1580_vm14  ;;  %vm1589_vm2 = vweird.f32 %v1560_v41 }
 0x687   : > { %v1575_v45 = vmul.f32 %v2462_v57, %v1574_v48  ;;  %v1572_v61 = vsel %vm1571_vm13, %v2460_v3, %v1568_v42  ;;  %v2305_v3 = vld [vmem:[%s3322_s13 + $0x18] sm:$0xff]  ;;  %v2302_v42 = vld [vmem:[%s3322_s13] sm:$0xff] }
 0x688   : > { %v1613_v52 = vmul.f32 %v1572_v61, %v3103_v5  ;;  %v2374_v5 = vld [vmem:[%s3319_s10] ss:$0 sm:$0xff] }
 0x689   : > { %v1576_v46 = vmul.f32 0.5, %v1575_v45  ;;  %v1550_v49 = vpop.xlane.xlu0 %1549 }
 0x68a   : > { %v1556_v19 = vmul.f32 0.020833334, %v1550_v49  ;;  %v1622_v6 = vmul.f32 %v3155_v44, %v1613_v52 }
 0x68b   : > { %v1577_v53 = vsub.f32 1.5, %v1576_v46 }
 0x68c   : > { %v2464_v50 = vpop.eup %2463  ;;  %v1561_v35 = vadd.f32 1e-05, %v1556_v19  ;;  %v3163_v12 = vadd.f32 %v2374_v5, %v1622_v6 }
 0x68d   : > { %v1578_v0 = vmul.f32 %v2462_v57, %v1577_v53  ;;  %v1584_v1 = vmul.f32 %v2464_v50, %v1560_v41  ;;  %vm1590_vm1 = vweird.f32 %v2464_v50 }
 0x68e   : > { %2465 = vrsqrt.f32 %v1561_v35  ;;  %vm1591_vm3 = vmor %vm1589_vm2, %vm1590_vm1  ;;  %vm1599_vm5 = vweird.f32 %v1561_v35 }
 0x68f   : > { %v1582_v4 = vsel %vm1581_vm0, %v2462_v57, %v1578_v0  ;;  %v1585_v47 = vmul.f32 %v2464_v50, %v1584_v1 }
 0x690   : > { %v1614_v54 = vmul.f32 %v1582_v4, %v3108_v56 }
 0x691   : > { %v1586_v7 = vmul.f32 0.5, %v1585_v47 }
 0x692   : > { %v1623_v10 = vmul.f32 %v3155_v44, %v1614_v54 }
 0x693   : > { %v1587_v21 = vsub.f32 1.5, %v1586_v7 }
 0x694   : > { %v2466_v13 = vpop.eup %2465  ;;  %v3165_v59 = vadd.f32 %v2374_v5, %v1623_v10  ;;  %v2376_v10 = vld [vmem:[%s3323_s14] ss:$0 sm:$0xff] }
 0x695   : > { %v1588_v14 = vmul.f32 %v2464_v50, %v1587_v21  ;;  %v1594_v22 = vmul.f32 %v2466_v13, %v1561_v35  ;;  %vm1600_vm4 = vweird.f32 %v2466_v13 }
 0x696   : > { %v1636_v56 = vpack.c.bf16 %v3165_v59, %v3163_v12  ;;  %vm1601_vm6 = vmor %vm1599_vm5, %vm1600_vm4 }
 0x697   : > { %v1595_v24 = vmul.f32 %v2466_v13, %v1594_v22  ;;  %v1592_v58 = vsel %vm1591_vm3, %v2464_v50, %v1588_v14 }
 0x698   : > { %1715 = vmatmul.bf16.vlgmr.msra.gmra.mxu3 %v1636_v56  ;;  %v1615_v55 = vmul.f32 %v1592_v58, %v3113_v17  ;;  %v2309_v17 = vld [vmem:[%s3322_s13 + $0x38] sm:$0xff] }
 0x699   : > { %v1596_v63 = vmul.f32 0.5, %v1595_v24  ;;  %1806 = vmatpush.bf16.msrb.mxu0 %v2309_v17 }
 0x69a   : > { %v1624_v38 = vmul.f32 %v3155_v44, %v1615_v55 }
 0x69b   : > { %v1597_v51 = vsub.f32 1.5, %v1596_v63 }
 0x69c   : > { %v3173_v18 = vadd.f32 %v2374_v5, %v1624_v38 }
 0x69d   : > { %v1598_v25 = vmul.f32 %v2466_v13, %v1597_v51 }
 0x69f   : > { %v1602_v9 = vsel %vm1601_vm6, %v2466_v13, %v1598_v25 }
 0x6a0   : > { %v1616_v20 = vmul.f32 %v1602_v9, %v3118_v8  ;;  %v2308_v8 = vld [vmem:[%s3322_s13 + $0x30] sm:$0xff] }
 0x6a1   : > { %1807 = vmatpush.bf16.msrb.mxu0 %v2308_v8 }
 0x6a2   : > { %v1625_v16 = vmul.f32 %v3155_v44, %v1616_v20 }
 0x6a4   : > { %v3175_v60 = vadd.f32 %v2374_v5, %v1625_v16 }
 0x6a5   : > { %1808 = vmatpush.bf16.msrb.mxu0 %v2307_v27 }
 0x6a6   : > { %v1637_v26 = vpack.c.bf16 %v3175_v60, %v3173_v18 }
 0x6a8   : > { %1720 = vmatmul.bf16.gmra.mxu3 %v1637_v26 }
 0x6a9   : > { %1809 = vmatpush.bf16.msrb.mxu0 %v2306_v29 }
 0x6ad   : > { %1810 = vmatpush.bf16.msrb.mxu0 %v2305_v3 }
 0x6b1   : > { %1811 = vmatpush.bf16.msrb.mxu0 %v2304_v31 }
 0x6b5   : > { %1812 = vmatpush.bf16.msrb.mxu0 %v2303_v40 }
 0x6b9   : > { %1813 = vmatpush.bf16.msrb.mxu0 %v2302_v42 }
 0x6e9   : > { %v1552_v11 = vpop.xlane.xlu1 %1551 }
 0x6ea   : > { %v1557_v62 = vmul.f32 0.020833334, %v1552_v11 }
 0x6ec   : > { %v1562_v23 = vadd.f32 1e-05, %v1557_v62 }
 0x6ee   : > { %2467 = vrsqrt.f32 %v1562_v23  ;;  %vm1609_vm8 = vweird.f32 %v1562_v23 }
 0x6f4   : > { %v2468_v30 = vpop.eup %2467 }
 0x6f5   : > { %v1604_v33 = vmul.f32 %v2468_v30, %v1562_v23  ;;  %vm1610_vm7 = vweird.f32 %v2468_v30 }
 0x6f6   : > { %vm1611_vm9 = vmor %vm1609_vm8, %vm1610_vm7 }
 0x6f7   : > { %v1605_v15 = vmul.f32 %v2468_v30, %v1604_v33 }
 0x6f9   : > { %v1606_v34 = vmul.f32 0.5, %v1605_v15 }
 0x6fb   : > { %v1607_v36 = vsub.f32 1.5, %v1606_v34 }
 0x6fd   : > { %v1608_v37 = vmul.f32 %v2468_v30, %v1607_v36 }
 0x6ff   : > { %v1612_v2 = vsel %vm1611_vm9, %v2468_v30, %v1608_v37 }
 0x700   : > { %v1617_v32 = vmul.f32 %v1612_v2, %v3144_v28  ;;  %v2375_v28 = vld [vmem:[%s3321_s12] ss:$0 sm:$0xff] }
 0x702   : > { %v1626_v39 = vmul.f32 %v3155_v44, %v1617_v32 }
 0x704   : > { %v1635_v57 = vadd.f32 %v2374_v5, %v1626_v39 }
 0x706   : > { %v1638_v41 = vpack.c.bf16 %v1635_v57, %v1635_v57 }
 0x708   : > { %1725 = vmatmul.bf16.gmra.mxu3 %v1638_v41 }
 0x71b   : > { %v1716_v48 = vpop.f32.mrf.mxu3 }
 0x71c   : > { %v1717_v45 = vadd.f32 %v2375_v28, %v1716_v48 }
 0x71e   : > { %v1730_v49 = vmax.f32 %v1717_v45, 0.0 }
 0x723   : > { %v1718_v61 = vpop.f32.mrf.mxu3 }
 0x724   : > { %v1719_v46 = vadd.f32 %v2375_v28, %v1718_v61 }
 0x726   : > { %v1731_v19 = vmax.f32 %v1719_v46, 0.0 }
 0x728   : > { %v1735_v53 = vpack.c.bf16 %v1731_v19, %v1730_v49 }
 0x72a   : > { %1814 = vmatmul.bf16.vlgmr.msrb.gmra.mxu0 %v1735_v53 }
 0x72b   : > { %v1721_v50 = vpop.f32.mrf.mxu3 }
 0x72c   : > { %v1722_v52 = vadd.f32 %v2375_v28, %v1721_v50 }
 0x72e   : > { %v1732_v0 = vmax.f32 %v1722_v52, 0.0 }
 0x733   : > { %v1723_v35 = vpop.f32.mrf.mxu3 }
 0x734   : > { %v1724_v44 = vadd.f32 %v2375_v28, %v1723_v35 }
 0x736   : > { %v1733_v1 = vmax.f32 %v1724_v44, 0.0 }
 0x738   : > { %v1736_v4 = vpack.c.bf16 %v1733_v1, %v1732_v0 }
 0x73a   : > { %1819 = vmatmul.bf16.gmra.mxu0 %v1736_v4 }
 0x78b   : > { %v1726_v47 = vpop.f32.mrf.mxu3 }
 0x78c   : > { %v1727_v54 = vadd.f32 %v2375_v28, %v1726_v47 }
 0x78e   : > { %v1734_v6 = vmax.f32 %v1727_v54, 0.0 }
 0x790   : > { %v1737_v5 = vpack.c.bf16 %v1734_v6, %v1734_v6 }
 0x792   : > { %1824 = vmatmul.bf16.gmra.mxu0 %v1737_v5 }
 0x793   : > { %v1728_v7 = vpop.f32.mrf.mxu3 }
 0x7a7   : > { %v1815_v21 = vpop.f32.mrf.mxu0 }
 0x7a8   : > { %v1816_v13 = vadd.f32 %v2376_v10, %v1815_v21 }
 0x7aa   : > { %v1829_v14 = vadd.f32 %v1816_v13, %v3163_v12 }
 0x7ac   : > { %v1834_v22 = vmul.f32 %v2777_v43, %v1829_v14 }
 0x7ae   : > { %1839 = vadd.xlane.f32.xlu2 %v1834_v22 }
 0x7af   : > { %v1817_v56 = vpop.f32.mrf.mxu0 }
 0x7b0   : > { %v1818_v24 = vadd.f32 %v2376_v10, %v1817_v56 }
 0x7b2   : > { %v1830_v63 = vadd.f32 %v1818_v24, %v3165_v59 }
 0x7b4   : > { %v1835_v58 = vmul.f32 %v2777_v43, %v1830_v63 }
 0x7b6   : > { %1841 = vadd.xlane.f32.xlu0 %v1835_v58 }
 0x7b7   : > { %v1820_v51 = vpop.f32.mrf.mxu0 }
 0x7b8   : > { %v1821_v55 = vadd.f32 %v2376_v10, %v1820_v51 }
 0x7ba   : > { %v1831_v25 = vadd.f32 %v1821_v55, %v3173_v18 }
 0x7bc   : > { %v1836_v9 = vmul.f32 %v2777_v43, %v1831_v25 }
 0x7be   : > { %1843 = vadd.xlane.f32.xlu1 %v1836_v9 }
 0x7bf   : > { %v1822_v20 = vpop.f32.mrf.mxu0 }
 0x7c0   : > { %v1823_v38 = vadd.f32 %v2376_v10, %v1822_v20 }
 0x7c2   : > { %v1832_v12 = vadd.f32 %v1823_v38, %v3175_v60 }
 0x7c4   : > { %v1837_v16 = vmul.f32 %v2777_v43, %v1832_v12 }
 0x7c6   : > { %1845 = vadd.xlane.f32.xlu2 %v1837_v16 }
 0x80f   : > { %v1825_v26 = vpop.f32.mrf.mxu0 }
 0x810   : > { %v1826_v17 = vadd.f32 %v2376_v10, %v1825_v26  ;;  %v3245_v10 = vld [vmem:[%s3324_s15] ss:$0 sm:$0xff] }
 0x812   : > { %v1833_v59 = vadd.f32 %v1826_v17, %v1635_v57 }
 0x814   : > { %v1838_v11 = vmul.f32 %v2777_v43, %v1833_v59 }
 0x816   : > { %1847 = vadd.xlane.f32.xlu0 %v1838_v11 }
 0x817   : > { %v1827_v62 = vpop.f32.mrf.mxu0 }
 0x821   : > { %v1840_v8 = vpop.xlane.xlu2 %1839 }
 0x822   : > { %v1849_v23 = vmul.f32 0.020833334, %v1840_v8 }
 0x824   : > { %v1854_v18 = vsub.f32 %v1829_v14, %v1849_v23  ;;  %v3252_v14 = vld [vmem:[%s3325_s16] ss:$0 sm:$0xff] }
 0x826   : > { %v1859_v27 = vmul.f32 %v2777_v43, %v1854_v18 }
 0x828   : > { %v1864_v29 = vmul.f32 %v1859_v27, %v1859_v27 }
 0x829   : > { %v1842_v30 = vpop.xlane.xlu0 %1841 }
 0x82a   : > { %v1850_v33 = vmul.f32 0.020833334, %v1842_v30  ;;  %1869 = vadd.xlane.f32.xlu1 %v1864_v29 }
 0x82c   : > { %v1855_v60 = vsub.f32 %v1830_v63, %v1850_v33 }
 0x82e   : > { %v3222_v15 = vmul.f32 %v2777_v43, %v1855_v60 }
 0x830   : > { %v1865_v34 = vmul.f32 %v3222_v15, %v3222_v15 }
 0x831   : > { %v1844_v3 = vpop.xlane.xlu1 %1843 }
 0x832   : > { %v1851_v36 = vmul.f32 0.020833334, %v1844_v3  ;;  %1871 = vadd.xlane.f32.xlu2 %v1865_v34 }
 0x834   : > { %v1856_v37 = vsub.f32 %v1831_v25, %v1851_v36 }
 0x836   : > { %v3227_v31 = vmul.f32 %v2777_v43, %v1856_v37 }
 0x838   : > { %v1866_v2 = vmul.f32 %v3227_v31, %v3227_v31 }
 0x839   : > { %v1846_v32 = vpop.xlane.xlu2 %1845 }
 0x83a   : > { %v1852_v39 = vmul.f32 0.020833334, %v1846_v32  ;;  %1873 = vadd.xlane.f32.xlu0 %v1866_v2 }
 0x83c   : > { %v1857_v40 = vsub.f32 %v1832_v12, %v1852_v39 }
 0x83e   : > { %v3232_v57 = vmul.f32 %v2777_v43, %v1857_v40 }
 0x840   : > { %v1867_v41 = vmul.f32 %v3232_v57, %v3232_v57 }
 0x842   : > { %1875 = vadd.xlane.f32.xlu1 %v1867_v41 }
 0x889   : > { %v1848_v42 = vpop.xlane.xlu0 %1847 }
 0x88a   : > { %v1853_v48 = vmul.f32 0.020833334, %v1848_v42 }
 0x88c   : > { %v1858_v28 = vsub.f32 %v1833_v59, %v1853_v48 }
 0x88e   : > { %v3237_v45 = vmul.f32 %v2777_v43, %v1858_v28 }
 0x890   : > { %v1868_v61 = vmul.f32 %v3237_v45, %v3237_v45 }
 0x892   : > { %1877 = vadd.xlane.f32.xlu2 %v1868_v61 }
 0x89d   : > { %v1870_v46 = vpop.xlane.xlu1 %1869 }
 0x89e   : > { %v1879_v49 = vmul.f32 0.020833334, %v1870_v46 }
 0x8a0   : > { %v1884_v19 = vadd.f32 1e-05, %v1879_v49 }
 0x8a2   : > { %2469 = vrsqrt.f32 %v1884_v19  ;;  %vm1895_vm11 = vweird.f32 %v1884_v19 }
 0x8a5   : > { %v1872_v53 = vpop.xlane.xlu2 %1871 }
 0x8a6   : > { %v1880_v50 = vmul.f32 0.020833334, %v1872_v53 }
 0x8a8   : > { %v2470_v52 = vpop.eup %2469  ;;  %v1885_v35 = vadd.f32 1e-05, %v1880_v50 }
 0x8a9   : > { %v1890_v44 = vmul.f32 %v2470_v52, %v1884_v19  ;;  %vm1896_vm10 = vweird.f32 %v2470_v52 }
 0x8aa   : > { %2471 = vrsqrt.f32 %v1885_v35  ;;  %vm1897_vm12 = vmor %vm1895_vm11, %vm1896_vm10  ;;  %vm1905_vm14 = vweird.f32 %v1885_v35 }
 0x8ab   : > { %v1891_v0 = vmul.f32 %v2470_v52, %v1890_v44 }
 0x8ad   : > { %v1892_v1 = vmul.f32 0.5, %v1891_v0  ;;  %v1874_v43 = vpop.xlane.xlu0 %1873 }
 0x8ae   : > { %v1881_v4 = vmul.f32 0.020833334, %v1874_v43 }
 0x8af   : > { %v1893_v47 = vsub.f32 1.5, %v1892_v1 }
 0x8b0   : > { %v2472_v54 = vpop.eup %2471  ;;  %v1886_v6 = vadd.f32 1e-05, %v1881_v4 }
 0x8b1   : > { %v1894_v5 = vmul.f32 %v2470_v52, %v1893_v47  ;;  %v1900_v7 = vmul.f32 %v2472_v54, %v1885_v35  ;;  %vm1906_vm13 = vweird.f32 %v2472_v54 }
 0x8b2   : > { %2473 = vrsqrt.f32 %v1886_v6  ;;  %vm1907_vm15 = vmor %vm1905_vm14, %vm1906_vm13  ;;  %vm1915_vm1 = vweird.f32 %v1886_v6 }
 0x8b3   : > { %v1898_v21 = vsel %vm1897_vm12, %v2470_v52, %v1894_v5  ;;  %v1901_v13 = vmul.f32 %v2472_v54, %v1900_v7 }
 0x8b4   : > { %v1939_v22 = vmul.f32 %v1898_v21, %v1859_v27 }
 0x8b5   : > { %v1902_v56 = vmul.f32 0.5, %v1901_v13  ;;  %v1876_v24 = vpop.xlane.xlu1 %1875 }
 0x8b6   : > { %v1948_v63 = vmul.f32 %v3245_v10, %v1939_v22  ;;  %v1882_v58 = vmul.f32 0.020833334, %v1876_v24 }
 0x8b7   : > { %v1903_v51 = vsub.f32 1.5, %v1902_v56 }
 0x8b8   : > { %v2474_v55 = vpop.eup %2473  ;;  %v1957_v25 = vadd.f32 %v3252_v14, %v1948_v63  ;;  %v1887_v9 = vadd.f32 1e-05, %v1882_v58 }
 0x8b9   : > { %v1904_v20 = vmul.f32 %v2472_v54, %v1903_v51  ;;  %v1910_v38 = vmul.f32 %v2474_v55, %v1886_v6  ;;  %vm1916_vm0 = vweird.f32 %v2474_v55 }
 0x8ba   : > { %1962 = vst [vmem:[%s3256_s30] sm:$0xff] %v1957_v25  ;;  %2475 = vrsqrt.f32 %v1887_v9  ;;  %vm1917_vm2 = vmor %vm1915_vm1, %vm1916_vm0  ;;  %vm1925_vm4 = vweird.f32 %v1887_v9 }
 0x8bb   : > { %v1908_v12 = vsel %vm1907_vm15, %v2472_v54, %v1904_v20  ;;  %v1911_v16 = vmul.f32 %v2474_v55, %v1910_v38 }
 0x8bc   : > { %v1940_v26 = vmul.f32 %v1908_v12, %v3222_v15 }
 0x8bd   : > { %v1912_v17 = vmul.f32 0.5, %v1911_v16 }
 0x8be   : > { %v1949_v59 = vmul.f32 %v3245_v10, %v1940_v26 }
 0x8bf   : > { %v1913_v11 = vsub.f32 1.5, %v1912_v17 }
 0x8c0   : > { %v2476_v62 = vpop.eup %2475  ;;  %v1958_v8 = vadd.f32 %v3252_v14, %v1949_v59 }
 0x8c1   : > { %v1914_v23 = vmul.f32 %v2474_v55, %v1913_v11  ;;  %v1920_v18 = vmul.f32 %v2476_v62, %v1887_v9  ;;  %vm1926_vm3 = vweird.f32 %v2476_v62 }
 0x8c2   : > { %1963 = vst [vmem:[%s3256_s30 + $0x8] sm:$0xff] %v1958_v8  ;;  %vm1927_vm5 = vmor %vm1925_vm4, %vm1926_vm3 }
 0x8c3   : > { %v1918_v27 = vsel %vm1917_vm2, %v2474_v55, %v1914_v23  ;;  %v1921_v29 = vmul.f32 %v2476_v62, %v1920_v18 }
 0x8c4   : > { %v1941_v30 = vmul.f32 %v1918_v27, %v3227_v31 }
 0x8c5   : > { %v1922_v33 = vmul.f32 0.5, %v1921_v29 }
 0x8c6   : > { %v1950_v60 = vmul.f32 %v3245_v10, %v1941_v30 }
 0x8c7   : > { %v1923_v15 = vsub.f32 1.5, %v1922_v33 }
 0x8c8   : > { %v1959_v34 = vadd.f32 %v3252_v14, %v1950_v60 }
 0x8c9   : > { %v1924_v3 = vmul.f32 %v2476_v62, %v1923_v15 }
 0x8ca   : > { %1964 = vst [vmem:[%s3256_s30 + $0x10] sm:$0xff] %v1959_v34 }
 0x8cb   : > { %v1928_v36 = vsel %vm1927_vm5, %v2476_v62, %v1924_v3 }
 0x8cc   : > { %v1942_v37 = vmul.f32 %v1928_v36, %v3232_v57 }
 0x8ce   : > { %v1951_v2 = vmul.f32 %v3245_v10, %v1942_v37 }
 0x8d0   : > { %v1960_v32 = vadd.f32 %v3252_v14, %v1951_v2 }
 0x8d2   : > { %1965 = vst [vmem:[%s3256_s30 + $0x18] sm:$0xff] %v1960_v32 }
 0x905   : > { %v1878_v31 = vpop.xlane.xlu2 %1877 }
 0x906   : > { %v1883_v39 = vmul.f32 0.020833334, %v1878_v31 }
 0x908   : > { %v1888_v40 = vadd.f32 1e-05, %v1883_v39 }
 0x90a   : > { %2477 = vrsqrt.f32 %v1888_v40  ;;  %vm1935_vm7 = vweird.f32 %v1888_v40 }
 0x910   : > { %v2478_v41 = vpop.eup %2477 }
 0x911   : > { %v1930_v42 = vmul.f32 %v2478_v41, %v1888_v40  ;;  %vm1936_vm6 = vweird.f32 %v2478_v41 }
 0x912   : > { %vm1937_vm8 = vmor %vm1935_vm7, %vm1936_vm6 }
 0x913   : > { %v1931_v48 = vmul.f32 %v2478_v41, %v1930_v42 }
 0x915   : > { %v1932_v28 = vmul.f32 0.5, %v1931_v48 }
 0x917   : > { %v1933_v61 = vsub.f32 1.5, %v1932_v28 }
 0x919   : > { %v1934_v57 = vmul.f32 %v2478_v41, %v1933_v61 }
 0x91b   : > { %v1938_v46 = vsel %vm1937_vm8, %v2478_v41, %v1934_v57 }
 0x91c   : > { %v1943_v49 = vmul.f32 %v1938_v46, %v3237_v45 }
 0x91e   : > { %v1952_v19 = vmul.f32 %v3245_v10, %v1943_v49 }
 0x920   : > { %v1961_v53 = vadd.f32 %v3252_v14, %v1952_v19 }
 0x922   : > { %1966 = vst [vmem:[%s3256_s30 + $0x20] sm:$0xff] %v1961_v53 }
 0x923   : > { %2511 = shalt.err (!%p2508_p3)
}
 0x924   : > { %s2549_s20 = smov 128   ;;  %s2550_s30 = smov 8  }
 0x925   : > { %2327 = dma.vmem_to_hbm [thread:$0]  (%p2679_p5), %s1981_s0, 640, %s1983_s21, %s1968_s28, %s2549_s20, %s2549_s20, %s2550_s30  }
 0x926 PF: > { %s3356_s2 = sld [smem:[#allocation7_spill]] }
 0x927   : > { %s3357_s3 = sld [smem:[#allocation5_spill]] }
 0x92c   : > { %p2333_p4 = scmp.ge.s32.totalorder %s3356_s2, 2 }
 0x92d   : > { %s1997_s26 = sand.u32 1, %s3357_s3  }
 0x92e   : > { %p2330_p7 = pnand %p2333_p4, %p2683_p6  ;;  %s1998_s19 = scalar_lea.sflag [#allocation3], %s1997_s26 }
 0x930   : > { %p2331_p8 = pneg %p2330_p7 }
 0x932   : > { %2529 = dma.done.wait (%p2331_p8), %s1998_s19, 640  }
 0x933   : > { %2531 = vsyncadd (%p2331_p8), %s1998_s19, 4294966656  ;;  %s3359_s27 = sld [smem:[#allocation8_spill]]  ;;  %s3362_s24 = smov %s2538_s25 }
 0x934   : > { %s3360_s22 = sld [smem:[#allocation6_spill]] }
 0x935   : > { %s3361_s26 = sld [smem:[#allocation9_spill]] }
 0x939   : > { %p27_p9 = scmp.ge.s32.totalorder %s3359_s27, 4  }
 0x93a   : > { %s3363_s25 = smov %s3360_s22 }
 0x93b   :  { %29 = sbr.rel (!%p27_p9) target bundleno = 9 (0x9), region = 123 }
 0x940   :  { %2004 = vsyncpa [#allocation3], 1 }
 0x941   :  { %2006 = vsyncpa [#allocation3 + $0x1], 1 }

</bundles_post_ra>
